<compile_context>
chip_gen: v5e
topology: v5e:2x2
jax: 0.10.0
libtpu: 0.0.40
codegen_flags: <defaults>
</compile_context>

<pallas_src>
import functools

import jax
import jax.numpy as jnp
from jax import lax
from jax.experimental import pallas as pl
from jax.experimental.pallas import tpu as pltpu

# ---------------------------------------------------------------- config
NUM_FEATURES = 8
CHANNELS = 32
ENCODER_KERNEL_SIZE = 3
DECODER_KERNEL_SIZE = 3
N_LAYERS = 2                      # layers inside frame_encoder / word_decoder
MATMUL_DTYPE = jnp.bfloat16       # MXU-native input dtype on v6e/v7x


# ------------------------------------------------------- in-kernel helpers
def _shifted_stack(x, ksize, lane_mod, seg_len):
    """x: (Cin, L) -> (ksize*Cin, L) with per-segment 'same' zero padding.

    `lane_mod` is the hoisted (1, L) iota of (lane % seg_len); packing several
    batch elements of length `seg_len` along the lane axis therefore never
    leaks values across batch boundaries.  Shifts are XLU rolls + lane masks
    (no padded VMEM copy).
    """
    _, length = x.shape
    pad = (ksize - 1) // 2
    parts = []
    for k in range(ksize):
        off = k - pad
        if off == 0:
            parts.append(x)
        elif off < 0:
            rolled = pltpu.roll(x, -off, axis=1)           # result[t] = x[t-|off|]
            parts.append(jnp.where(lane_mod < -off, 0.0, rolled))
        else:
            rolled = pltpu.roll(x, length - off, axis=1)   # result[t] = x[t+off]
            parts.append(jnp.where(lane_mod >= seg_len - off, 0.0, rolled))
    return jnp.concatenate(parts, axis=0)


def _conv_same(x, w_flat, bias, ksize, lane_mod, seg_len, relu):
    """x: (Cin, L) f32, w_flat: (Cout, ksize*Cin) bf16, bias: (Cout, 1) f32."""
    stacked = _shifted_stack(x, ksize, lane_mod, seg_len)          # (K*Cin, L) f32
    y = jnp.dot(w_flat, stacked.astype(w_flat.dtype),
                preferred_element_type=jnp.float32) + bias
    if relu:
        y = jnp.maximum(y, 0.0)
    return y


# ----------------------------------------------------------- fused kernel
def _fused_forward_kernel(feat_ref, bounds_ref,
                          w_in_ref, b_in_ref,
                          w_enc_ref, b_enc_ref,
                          w_dec_ref, b_dec_ref,
                          w_out_ref, b_out_ref,
                          o_ref, *, n_layers, enc_ksize, dec_ksize,
                          n_frames, n_words):
    packed_t = feat_ref.shape[2]          # bp * n_frames
    packed_w = bounds_ref.shape[2]        # bp * n_words

    # Hoisted lane iotas (reused by every conv layer / downsample build).
    lane_t = lax.broadcasted_iota(jnp.int32, (1, packed_t), 1) % n_frames
    lane_w = lax.broadcasted_iota(jnp.int32, (1, packed_w), 1) % n_words

    # ---- input layer + frame encoder: (F, bp*T) -> (C, bp*T)
    x = feat_ref[0].astype(jnp.float32)
    x = _conv_same(x, w_in_ref[...], b_in_ref[...], enc_ksize,
                   lane_t, n_frames, relu=False)
    for layer in range(n_layers):
        x = _conv_same(x, w_enc_ref[layer], b_enc_ref[layer], enc_ksize,
                       lane_t, n_frames, relu=True)

    # ---- average downsample: (C, bp*T) -> (C, bp*W) via one mask matmul.
    # Bounds were offset by (local_batch * T) in the wrapper, so the mask is
    # block-diagonal across packed batch elements by construction; padded
    # words have start==end -> zero column -> mean 0.
    bounds = bounds_ref[0]                                  # (2, bp*W) int32
    starts = bounds[0:1, :]                                 # (1, bp*W)
    ends = bounds[1:2, :]                                   # (1, bp*W)
    t_idx = lax.broadcasted_iota(jnp.int32, (packed_t, packed_w), 0)
    in_word = (t_idx >= starts) & (t_idx < ends)
    mask = jnp.where(in_word, 1.0, 0.0).astype(MATMUL_DTYPE)
    word_sum = jnp.dot(x.astype(MATMUL_DTYPE), mask,
                       preferred_element_type=jnp.float32)  # (C, bp*W)
    counts = jnp.maximum(ends - starts, 1).astype(jnp.float32)
    x = word_sum * pl.reciprocal(counts, approx=False)      # exact mean

    # ---- word decoder
    for layer in range(n_layers):
        x = _conv_same(x, w_dec_ref[layer], b_dec_ref[layer], dec_ksize,
                       lane_w, n_words, relu=True)

    # ---- output layer Conv1d(C->1): single (1, K*C) x (K*C, bp*W) MXU dot.
    stacked = _shifted_stack(x, dec_ksize, lane_w, n_words)
    out = jnp.dot(w_out_ref[...], stacked.astype(w_out_ref.dtype),
                  preferred_element_type=jnp.float32) + b_out_ref[...]
    o_ref[0] = out.astype(o_ref.dtype)                      # lane-dense (1, bp*W)


# ---------------------------------------------------------------- wrapper
def fused_forward(params, features, word_bounds, word_lengths):
    """features: (B, NUM_FEATURES, T) PyTorch NCL  ->  (B, 1, n_words)."""
    bsz, nf, n_frames = features.shape
    n_words = word_bounds.shape[2]

    # Two "parallel" grid steps keep both v7x TensorCores busy; everything
    # else (bp batch elements per step) is packed along the lane axis.
    n_groups = min(2, bsz)
    bp = -(-bsz // n_groups)                    # ceil
    padded_b = n_groups * bp

    feats = features.astype(jnp.float32)
    wb = word_bounds.astype(jnp.int32)
    wl = word_lengths.astype(jnp.int32)
    if padded_b != bsz:
        feats = jnp.pad(feats, ((0, padded_b - bsz), (0, 0), (0, 0)))
        wb = jnp.pad(wb, ((0, padded_b - bsz), (0, 0), (0, 0)))
        wl = jnp.pad(wl, ((0, padded_b - bsz),))

    # Force padded words to degenerate bounds (start==end) so their averaged
    # embedding is exactly 0 (matches zero-filled padded words in reference);
    # this removes the word_lengths operand from the kernel entirely.
    valid = jnp.arange(n_words, dtype=jnp.int32)[None, :] < wl[:, None]
    wb = jnp.where(valid[:, None, :], wb, 0)

    # Pack bp batch elements along the lane axis per grid step.
    feats_packed = feats.reshape(n_groups, bp, nf, n_frames)
    feats_packed = feats_packed.transpose(0, 2, 1, 3).reshape(
        n_groups, nf, bp * n_frames)
    offs = jnp.arange(bp, dtype=jnp.int32) * n_frames
    wb_packed = wb.reshape(n_groups, bp, 2, n_words) + offs[None, :, None, None]
    wb_packed = wb_packed.transpose(0, 2, 1, 3).reshape(
        n_groups, 2, bp * n_words)

    packed_t = bp * n_frames
    packed_w = bp * n_words

    # VMEM budget: double-buffered feature block + bf16 downsample mask +
    # stacked/activation temporaries + weights/headroom, clamped to v7x's
    # 64 MiB physical VMEM.
    # TODO(synk): for very long utterances chunk the downsample mask matmul
    # over T (accumulate word_sum per T-chunk) instead of relying on VMEM.
    est = (2 * 4 * nf * packed_t
           + 2 * packed_t * packed_w
           + 4 * 4 * ENCODER_KERNEL_SIZE * CHANNELS * packed_t
           + 4 * 4 * DECODER_KERNEL_SIZE * CHANNELS * packed_w
           + (2 << 20))
    vmem_limit = int(min(64 << 20, max(32 << 20, est)))

    kernel = functools.partial(
        _fused_forward_kernel, n_layers=N_LAYERS,
        enc_ksize=ENCODER_KERNEL_SIZE, dec_ksize=DECODER_KERNEL_SIZE,
        n_frames=n_frames, n_words=n_words)

    def const2(g):
        return (0, 0)

    def const3(g):
        return (0, 0, 0)

    out = pl.pallas_call(
        kernel,
        out_shape=jax.ShapeDtypeStruct((n_groups, 1, packed_w), features.dtype),
        grid=(n_groups,),
        in_specs=[
            pl.BlockSpec((1, nf, packed_t), lambda g: (g, 0, 0)),   # features
            pl.BlockSpec((1, 2, packed_w), lambda g: (g, 0, 0)),    # word bounds
            pl.BlockSpec(params['w_in'].shape, const2),
            pl.BlockSpec(params['b_in'].shape, const2),
            pl.BlockSpec(params['w_enc'].shape, const3),
            pl.BlockSpec(params['b_enc'].shape, const3),
            pl.BlockSpec(params['w_dec'].shape, const3),
            pl.BlockSpec(params['b_dec'].shape, const3),
            pl.BlockSpec(params['w_out'].shape, const2),
            pl.BlockSpec(params['b_out'].shape, const2),
        ],
        out_specs=pl.BlockSpec((1, 1, packed_w), lambda g: (g, 0, 0)),
        compiler_params=pltpu.CompilerParams(
            dimension_semantics=("parallel",),
            vmem_limit_bytes=vmem_limit),
    )(feats_packed, wb_packed,
      params['w_in'], params['b_in'],
      params['w_enc'], params['b_enc'],
      params['w_dec'], params['b_dec'],
      params['w_out'], params['b_out'])

    # Unpack the lane-dense (n_groups, 1, bp*W) slab back to (B, 1, W).
    out = out.reshape(n_groups, 1, bp, n_words).transpose(0, 2, 1, 3)
    return out.reshape(padded_b, 1, n_words)[:bsz]


# ---------------------------------------------------------------- params
def _torch_conv_init(key, cout, cin, k):
    """Matches torch.nn.Conv1d default init; weight in torch layout (Cout,Cin,K)."""
    kw, kb = jax.random.split(key)
    scale = 1.0 / jnp.sqrt(float(cin * k))
    w = jax.random.uniform(kw, (cout, cin, k), jnp.float32, -scale, scale)
    b = jax.random.uniform(kb, (cout,), jnp.float32, -scale, scale)
    return w, b


def _flatten_conv_weight(w_torch):
    """Torch (Cout, Cin, K) -> kernel layout (Cout, K*Cin) matching _shifted_stack."""
    cout, cin, k = w_torch.shape
    return jnp.transpose(w_torch, (0, 2, 1)).reshape(cout, k * cin)


def init_params(key):
    keys = jax.random.split(key, 2 + 2 * N_LAYERS)
    w_in, b_in = _torch_conv_init(keys[0], CHANNELS, NUM_FEATURES,
                                  ENCODER_KERNEL_SIZE)
    w_out, b_out = _torch_conv_init(keys[1], 1, CHANNELS, DECODER_KERNEL_SIZE)
    enc = [_torch_conv_init(keys[2 + i], CHANNELS, CHANNELS,
                            ENCODER_KERNEL_SIZE) for i in range(N_LAYERS)]
    dec = [_torch_conv_init(keys[2 + N_LAYERS + i], CHANNELS, CHANNELS,
                            DECODER_KERNEL_SIZE) for i in range(N_LAYERS)]
    mm = MATMUL_DTYPE
    return {
        # Matmul weights stored bf16 (MXU-native); biases stay f32 (VPU add).
        'w_in': _flatten_conv_weight(w_in).astype(mm),                 # (C, K*F)
        'b_in': b_in.reshape(CHANNELS, 1),                             # (C, 1)
        'w_enc': jnp.stack([_flatten_conv_weight(w) for w, _ in enc]).astype(mm),
        'b_enc': jnp.stack([b.reshape(CHANNELS, 1) for _, b in enc]),
        'w_dec': jnp.stack([_flatten_conv_weight(w) for w, _ in dec]).astype(mm),
        'b_dec': jnp.stack([b.reshape(CHANNELS, 1) for _, b in dec]),
        'w_out': _flatten_conv_weight(w_out).astype(mm),               # (1, K*C)
        'b_out': b_out.reshape(1, 1),                                  # (1, 1)
    }


# --------------------------------------------------------------- forward
@jax.jit
def model_forward(params, features, frame_lengths, word_bounds, word_lengths):
    """features: (B, NUM_FEATURES, T_frames) NCL -> (B, 1, n_words) NCL."""
    # TODO(synk): frame_lengths is unused -- the convolutional Layers variant
    # of emphases.model.Layers ignores sequence lengths (matches reference).
    del frame_lengths
    return fused_forward(params, features, word_bounds, word_lengths)


# ------------------------------------------------------------------ main
if __name__ == "__main__":
    key = jax.random.PRNGKey(0)
    pkey, fkey = jax.random.split(key)
    params = init_params(pkey)

    B, T_FRAMES, N_WORDS = 2, 16, 4
    features = jax.random.normal(fkey, (B, NUM_FEATURES, T_FRAMES), jnp.float32)
    frame_lengths = jnp.array([16, 14], dtype=jnp.int32)
    word_lengths = jnp.array([4, 3], dtype=jnp.int32)
    # word_bounds[b, 0, w] = start frame, word_bounds[b, 1, w] = end (exclusive)
    word_bounds = jnp.array(
        [[[0, 4, 8, 12], [4, 8, 12, 16]],
         [[0, 5, 10, 0], [5, 10, 14, 0]]], dtype=jnp.int32)

    out = model_forward(params, features, frame_lengths, word_bounds,
                        word_lengths)
    jax.block_until_ready(out)
    assert out.shape == (B, 1, N_WORDS), out.shape
    # TODO(synk): only the default 'intermediate'/'average' config path is
    # implemented; other DOWNSAMPLE_LOCATION/METHOD branches and the
    # transformer Layers variant are not.
    print("KERNEL_OK")
</pallas_src>

<mosaic_0001>
module attributes {stable_mosaic.version = 11 : i64} {
  func.func @_fused_forward_kernel(%arg0: i32, %arg1: memref<1x8x16xf32, #tpu.memory_space<vmem>>, %arg2: memref<1x2x4xi32, #tpu.memory_space<vmem>>, %arg3: memref<32x24xbf16, #tpu.memory_space<vmem>>, %arg4: memref<32x1xf32, #tpu.memory_space<vmem>>, %arg5: memref<2x32x96xbf16, #tpu.memory_space<vmem>>, %arg6: memref<2x32x1xf32, #tpu.memory_space<vmem>>, %arg7: memref<2x32x96xbf16, #tpu.memory_space<vmem>>, %arg8: memref<2x32x1xf32, #tpu.memory_space<vmem>>, %arg9: memref<1x96xbf16, #tpu.memory_space<vmem>>, %arg10: memref<1x1xf32, #tpu.memory_space<vmem>>, %arg11: memref<1x1x4xf32, #tpu.memory_space<vmem>>) attributes {dimension_semantics = [#tpu.dimension_semantics<parallel>], iteration_bounds = array<i64: 2>, scalar_prefetch = 0 : i64, scratch_operands = 0 : i64, tpu.core_type = #tpu.core_type<tc>, window_params = [{transform_indices = @transform_0, window_bounds = array<i64: 1, 8, 16>}, {transform_indices = @transform_1, window_bounds = array<i64: 1, 2, 4>}, {pipeline_mode = #tpu.pipeline_mode<synchronous>, transform_indices = @transform_2, window_bounds = array<i64: 32, 24>}, {pipeline_mode = #tpu.pipeline_mode<synchronous>, transform_indices = @transform_3, window_bounds = array<i64: 32, 1>}, {pipeline_mode = #tpu.pipeline_mode<synchronous>, transform_indices = @transform_4, window_bounds = array<i64: 2, 32, 96>}, {pipeline_mode = #tpu.pipeline_mode<synchronous>, transform_indices = @transform_5, window_bounds = array<i64: 2, 32, 1>}, {pipeline_mode = #tpu.pipeline_mode<synchronous>, transform_indices = @transform_6, window_bounds = array<i64: 2, 32, 96>}, {pipeline_mode = #tpu.pipeline_mode<synchronous>, transform_indices = @transform_7, window_bounds = array<i64: 2, 32, 1>}, {pipeline_mode = #tpu.pipeline_mode<synchronous>, transform_indices = @transform_8, window_bounds = array<i64: 1, 96>}, {pipeline_mode = #tpu.pipeline_mode<synchronous>, transform_indices = @transform_9, window_bounds = array<i64: 1, 1>}, {transform_indices = @transform_10, window_bounds = array<i64: 1, 1, 4>}]} {
    %0 = tpu.iota {dimensions = array<i32: 1>} : vector<1x16xi32>
    %c16_i32 = arith.constant 16 : i32
    %c0_i32 = arith.constant 0 : i32
    %1 = arith.cmpi eq, %c16_i32, %c0_i32 : i32
    %c1_i32 = arith.constant 1 : i32
    %2 = arith.select %1, %c1_i32, %c16_i32 : i32
    %3 = vector.broadcast %2 : i32 to vector<1x16xi32>
    %4 = arith.remsi %0, %3 : vector<1x16xi32>
    %c0_i32_0 = arith.constant 0 : i32
    %5 = vector.broadcast %c0_i32_0 : i32 to vector<1x16xi32>
    %6 = arith.cmpi ne, %4, %5 : vector<1x16xi32>
    %c0_i32_1 = arith.constant 0 : i32
    %7 = vector.broadcast %c0_i32_1 : i32 to vector<1x16xi32>
    %8 = arith.cmpi slt, %4, %7 : vector<1x16xi32>
    %c0_i32_2 = arith.constant 0 : i32
    %9 = arith.cmpi slt, %2, %c0_i32_2 : i32
    %10 = vector.broadcast %9 : i1 to vector<1x16xi1>
    %11 = vector.broadcast %10 : vector<1x16xi1> to vector<1x16xi1>
    %12 = arith.xori %8, %11 : vector<1x16xi1>
    %13 = arith.andi %12, %6 : vector<1x16xi1>
    %14 = vector.broadcast %2 : i32 to vector<1x16xi32>
    %15 = arith.addi %4, %14 : vector<1x16xi32>
    %16 = arith.select %13, %15, %4 : vector<1x16xi1>, vector<1x16xi32>
    %17 = tpu.iota {dimensions = array<i32: 1>} : vector<1x4xi32>
    %c4_i32 = arith.constant 4 : i32
    %c0_i32_3 = arith.constant 0 : i32
    %18 = arith.cmpi eq, %c4_i32, %c0_i32_3 : i32
    %c1_i32_4 = arith.constant 1 : i32
    %19 = arith.select %18, %c1_i32_4, %c4_i32 : i32
    %20 = vector.broadcast %19 : i32 to vector<1x4xi32>
    %21 = arith.remsi %17, %20 : vector<1x4xi32>
    %c0_i32_5 = arith.constant 0 : i32
    %22 = vector.broadcast %c0_i32_5 : i32 to vector<1x4xi32>
    %23 = arith.cmpi ne, %21, %22 : vector<1x4xi32>
    %c0_i32_6 = arith.constant 0 : i32
    %24 = vector.broadcast %c0_i32_6 : i32 to vector<1x4xi32>
    %25 = arith.cmpi slt, %21, %24 : vector<1x4xi32>
    %c0_i32_7 = arith.constant 0 : i32
    %26 = arith.cmpi slt, %19, %c0_i32_7 : i32
    %27 = vector.broadcast %26 : i1 to vector<1x4xi1>
    %28 = vector.broadcast %27 : vector<1x4xi1> to vector<1x4xi1>
    %29 = arith.xori %25, %28 : vector<1x4xi1>
    %30 = arith.andi %29, %23 : vector<1x4xi1>
    %31 = vector.broadcast %19 : i32 to vector<1x4xi32>
    %32 = arith.addi %21, %31 : vector<1x4xi32>
    %33 = arith.select %30, %32, %21 : vector<1x4xi1>, vector<1x4xi32>
    %c0 = arith.constant 0 : index
    %c0_8 = arith.constant 0 : index
    %c0_9 = arith.constant 0 : index
    %34 = vector.load %arg1[%c0, %c0_8, %c0_9] : memref<1x8x16xf32, #tpu.memory_space<vmem>>, vector<1x8x16xf32>
    %35 = vector.shape_cast %34 : vector<1x8x16xf32> to vector<8x16xf32>
    %c0_10 = arith.constant 0 : index
    %c0_11 = arith.constant 0 : index
    %36 = vector.load %arg3[%c0_10, %c0_11] : memref<32x24xbf16, #tpu.memory_space<vmem>>, vector<32x24xbf16>
    %c0_12 = arith.constant 0 : index
    %c0_13 = arith.constant 0 : index
    %37 = vector.load %arg4[%c0_12, %c0_13] : memref<32x1xf32, #tpu.memory_space<vmem>>, vector<32x1xf32>
    %c1_i32_14 = arith.constant 1 : i32
    %38 = tpu.dynamic_rotate %35 by %c1_i32_14 dim 1 : vector<8x16xf32>, i32 -> vector<8x16xf32>
    %c1_i32_15 = arith.constant 1 : i32
    %39 = vector.broadcast %c1_i32_15 : i32 to vector<1x16xi32>
    %40 = arith.cmpi slt, %16, %39 : vector<1x16xi32>
    %cst = arith.constant 0.000000e+00 : f32
    %41 = vector.shape_cast %40 : vector<1x16xi1> to vector<1x16xi1>
    %42 = vector.broadcast %41 : vector<1x16xi1> to vector<8x16xi1>
    %43 = vector.broadcast %cst : f32 to vector<8x16xf32>
    %44 = arith.select %42, %43, %38 : vector<8x16xi1>, vector<8x16xf32>
    %c15_i32 = arith.constant 15 : i32
    %45 = tpu.dynamic_rotate %35 by %c15_i32 dim 1 : vector<8x16xf32>, i32 -> vector<8x16xf32>
    %c15_i32_16 = arith.constant 15 : i32
    %46 = vector.broadcast %c15_i32_16 : i32 to vector<1x16xi32>
    %47 = arith.cmpi sge, %16, %46 : vector<1x16xi32>
    %cst_17 = arith.constant 0.000000e+00 : f32
    %48 = vector.shape_cast %47 : vector<1x16xi1> to vector<1x16xi1>
    %49 = vector.broadcast %48 : vector<1x16xi1> to vector<8x16xi1>
    %50 = vector.broadcast %cst_17 : f32 to vector<8x16xf32>
    %51 = arith.select %49, %50, %45 : vector<8x16xi1>, vector<8x16xf32>
    %52 = tpu.concatenate %44, %35, %51 in 0 : vector<8x16xf32>, vector<8x16xf32>, vector<8x16xf32> -> vector<24x16xf32>
    %53 = arith.truncf %52 : vector<24x16xf32> to vector<24x16xbf16>
    %cst_18 = arith.constant dense<0.000000e+00> : vector<32x16xf32>
    %54 = tpu.matmul %36, %53, %cst_18 {dimension_numbers = #tpu.dot_dimension_numbers<[1], [0], [0], [1], [0, 0, 1, 1], [], []>} : vector<32x24xbf16>, vector<24x16xbf16>, vector<32x16xf32> -> vector<32x16xf32>
    %55 = vector.broadcast %37 : vector<32x1xf32> to vector<32x16xf32>
    %56 = arith.addf %54, %55 : vector<32x16xf32>
    %c0_19 = arith.constant 0 : index
    %c0_20 = arith.constant 0 : index
    %c0_21 = arith.constant 0 : index
    %57 = vector.load %arg5[%c0_19, %c0_20, %c0_21] : memref<2x32x96xbf16, #tpu.memory_space<vmem>>, vector<1x32x96xbf16>
    %58 = vector.shape_cast %57 : vector<1x32x96xbf16> to vector<32x96xbf16>
    %c0_22 = arith.constant 0 : index
    %c0_23 = arith.constant 0 : index
    %c0_24 = arith.constant 0 : index
    %59 = vector.load %arg6[%c0_22, %c0_23, %c0_24] : memref<2x32x1xf32, #tpu.memory_space<vmem>>, vector<1x32x1xf32>
    %60 = vector.shape_cast %59 : vector<1x32x1xf32> to vector<32x1xf32>
    %c1_i32_25 = arith.constant 1 : i32
    %61 = tpu.dynamic_rotate %56 by %c1_i32_25 dim 1 : vector<32x16xf32>, i32 -> vector<32x16xf32>
    %c1_i32_26 = arith.constant 1 : i32
    %62 = vector.broadcast %c1_i32_26 : i32 to vector<1x16xi32>
    %63 = arith.cmpi slt, %16, %62 : vector<1x16xi32>
    %cst_27 = arith.constant 0.000000e+00 : f32
    %64 = vector.shape_cast %63 : vector<1x16xi1> to vector<1x16xi1>
    %65 = vector.broadcast %64 : vector<1x16xi1> to vector<32x16xi1>
    %66 = vector.broadcast %cst_27 : f32 to vector<32x16xf32>
    %67 = arith.select %65, %66, %61 : vector<32x16xi1>, vector<32x16xf32>
    %c15_i32_28 = arith.constant 15 : i32
    %68 = tpu.dynamic_rotate %56 by %c15_i32_28 dim 1 : vector<32x16xf32>, i32 -> vector<32x16xf32>
    %c15_i32_29 = arith.constant 15 : i32
    %69 = vector.broadcast %c15_i32_29 : i32 to vector<1x16xi32>
    %70 = arith.cmpi sge, %16, %69 : vector<1x16xi32>
    %cst_30 = arith.constant 0.000000e+00 : f32
    %71 = vector.shape_cast %70 : vector<1x16xi1> to vector<1x16xi1>
    %72 = vector.broadcast %71 : vector<1x16xi1> to vector<32x16xi1>
    %73 = vector.broadcast %cst_30 : f32 to vector<32x16xf32>
    %74 = arith.select %72, %73, %68 : vector<32x16xi1>, vector<32x16xf32>
    %75 = tpu.concatenate %67, %56, %74 in 0 : vector<32x16xf32>, vector<32x16xf32>, vector<32x16xf32> -> vector<96x16xf32>
    %76 = arith.truncf %75 : vector<96x16xf32> to vector<96x16xbf16>
    %cst_31 = arith.constant dense<0.000000e+00> : vector<32x16xf32>
    %77 = tpu.matmul %58, %76, %cst_31 {dimension_numbers = #tpu.dot_dimension_numbers<[1], [0], [0], [1], [0, 0, 1, 1], [], []>} : vector<32x96xbf16>, vector<96x16xbf16>, vector<32x16xf32> -> vector<32x16xf32>
    %78 = vector.broadcast %60 : vector<32x1xf32> to vector<32x16xf32>
    %79 = arith.addf %77, %78 : vector<32x16xf32>
    %cst_32 = arith.constant 0.000000e+00 : f32
    %80 = vector.broadcast %cst_32 : f32 to vector<32x16xf32>
    %81 = arith.maximumf %79, %80 : vector<32x16xf32>
    %c1 = arith.constant 1 : index
    %c0_33 = arith.constant 0 : index
    %c0_34 = arith.constant 0 : index
    %82 = vector.load %arg5[%c1, %c0_33, %c0_34] : memref<2x32x96xbf16, #tpu.memory_space<vmem>>, vector<1x32x96xbf16>
    %83 = vector.shape_cast %82 : vector<1x32x96xbf16> to vector<32x96xbf16>
    %c1_35 = arith.constant 1 : index
    %c0_36 = arith.constant 0 : index
    %c0_37 = arith.constant 0 : index
    %84 = vector.load %arg6[%c1_35, %c0_36, %c0_37] : memref<2x32x1xf32, #tpu.memory_space<vmem>>, vector<1x32x1xf32>
    %85 = vector.shape_cast %84 : vector<1x32x1xf32> to vector<32x1xf32>
    %c1_i32_38 = arith.constant 1 : i32
    %86 = tpu.dynamic_rotate %81 by %c1_i32_38 dim 1 : vector<32x16xf32>, i32 -> vector<32x16xf32>
    %c1_i32_39 = arith.constant 1 : i32
    %87 = vector.broadcast %c1_i32_39 : i32 to vector<1x16xi32>
    %88 = arith.cmpi slt, %16, %87 : vector<1x16xi32>
    %cst_40 = arith.constant 0.000000e+00 : f32
    %89 = vector.shape_cast %88 : vector<1x16xi1> to vector<1x16xi1>
    %90 = vector.broadcast %89 : vector<1x16xi1> to vector<32x16xi1>
    %91 = vector.broadcast %cst_40 : f32 to vector<32x16xf32>
    %92 = arith.select %90, %91, %86 : vector<32x16xi1>, vector<32x16xf32>
    %c15_i32_41 = arith.constant 15 : i32
    %93 = tpu.dynamic_rotate %81 by %c15_i32_41 dim 1 : vector<32x16xf32>, i32 -> vector<32x16xf32>
    %c15_i32_42 = arith.constant 15 : i32
    %94 = vector.broadcast %c15_i32_42 : i32 to vector<1x16xi32>
    %95 = arith.cmpi sge, %16, %94 : vector<1x16xi32>
    %cst_43 = arith.constant 0.000000e+00 : f32
    %96 = vector.shape_cast %95 : vector<1x16xi1> to vector<1x16xi1>
    %97 = vector.broadcast %96 : vector<1x16xi1> to vector<32x16xi1>
    %98 = vector.broadcast %cst_43 : f32 to vector<32x16xf32>
    %99 = arith.select %97, %98, %93 : vector<32x16xi1>, vector<32x16xf32>
    %100 = tpu.concatenate %92, %81, %99 in 0 : vector<32x16xf32>, vector<32x16xf32>, vector<32x16xf32> -> vector<96x16xf32>
    %101 = arith.truncf %100 : vector<96x16xf32> to vector<96x16xbf16>
    %cst_44 = arith.constant dense<0.000000e+00> : vector<32x16xf32>
    %102 = tpu.matmul %83, %101, %cst_44 {dimension_numbers = #tpu.dot_dimension_numbers<[1], [0], [0], [1], [0, 0, 1, 1], [], []>} : vector<32x96xbf16>, vector<96x16xbf16>, vector<32x16xf32> -> vector<32x16xf32>
    %103 = vector.broadcast %85 : vector<32x1xf32> to vector<32x16xf32>
    %104 = arith.addf %102, %103 : vector<32x16xf32>
    %cst_45 = arith.constant 0.000000e+00 : f32
    %105 = vector.broadcast %cst_45 : f32 to vector<32x16xf32>
    %106 = arith.maximumf %104, %105 : vector<32x16xf32>
    %c0_46 = arith.constant 0 : index
    %c0_47 = arith.constant 0 : index
    %c0_48 = arith.constant 0 : index
    %107 = vector.load %arg2[%c0_46, %c0_47, %c0_48] : memref<1x2x4xi32, #tpu.memory_space<vmem>>, vector<1x2x4xi32>
    %108 = vector.shape_cast %107 : vector<1x2x4xi32> to vector<2x4xi32>
    %109 = vector.extract_strided_slice %108 {offsets = [0, 0], sizes = [1, 4], strides = [1, 1]} : vector<2x4xi32> to vector<1x4xi32>
    %110 = vector.extract_strided_slice %108 {offsets = [1, 0], sizes = [1, 4], strides = [1, 1]} : vector<2x4xi32> to vector<1x4xi32>
    %111 = tpu.iota {dimensions = array<i32: 0>} : vector<16x4xi32>
    %112 = vector.broadcast %109 : vector<1x4xi32> to vector<16x4xi32>
    %113 = arith.cmpi sge, %111, %112 : vector<16x4xi32>
    %114 = vector.broadcast %110 : vector<1x4xi32> to vector<16x4xi32>
    %115 = arith.cmpi slt, %111, %114 : vector<16x4xi32>
    %116 = arith.andi %113, %115 : vector<16x4xi1>
    %cst_49 = arith.constant 1.000000e+00 : f32
    %cst_50 = arith.constant 0.000000e+00 : f32
    %117 = vector.broadcast %cst_49 : f32 to vector<16x4xf32>
    %118 = vector.broadcast %cst_50 : f32 to vector<16x4xf32>
    %119 = arith.select %116, %117, %118 : vector<16x4xi1>, vector<16x4xf32>
    %120 = arith.truncf %119 : vector<16x4xf32> to vector<16x4xbf16>
    %121 = arith.truncf %106 : vector<32x16xf32> to vector<32x16xbf16>
    %cst_51 = arith.constant dense<0.000000e+00> : vector<32x4xf32>
    %122 = tpu.matmul %121, %120, %cst_51 {dimension_numbers = #tpu.dot_dimension_numbers<[1], [0], [0], [1], [0, 0, 1, 1], [], []>} : vector<32x16xbf16>, vector<16x4xbf16>, vector<32x4xf32> -> vector<32x4xf32>
    %123 = arith.subi %110, %109 : vector<1x4xi32>
    %c1_i32_52 = arith.constant 1 : i32
    %124 = vector.broadcast %c1_i32_52 : i32 to vector<1x4xi32>
    %125 = arith.maxsi %123, %124 : vector<1x4xi32>
    %126 = arith.sitofp %125 : vector<1x4xi32> to vector<1x4xf32>
    %127 = tpu.reciprocal %126 : vector<1x4xf32> -> vector<1x4xf32>
    %128 = vector.broadcast %127 : vector<1x4xf32> to vector<32x4xf32>
    %129 = arith.mulf %122, %128 : vector<32x4xf32>
    %c0_53 = arith.constant 0 : index
    %c0_54 = arith.constant 0 : index
    %c0_55 = arith.constant 0 : index
    %130 = vector.load %arg7[%c0_53, %c0_54, %c0_55] : memref<2x32x96xbf16, #tpu.memory_space<vmem>>, vector<1x32x96xbf16>
    %131 = vector.shape_cast %130 : vector<1x32x96xbf16> to vector<32x96xbf16>
    %c0_56 = arith.constant 0 : index
    %c0_57 = arith.constant 0 : index
    %c0_58 = arith.constant 0 : index
    %132 = vector.load %arg8[%c0_56, %c0_57, %c0_58] : memref<2x32x1xf32, #tpu.memory_space<vmem>>, vector<1x32x1xf32>
    %133 = vector.shape_cast %132 : vector<1x32x1xf32> to vector<32x1xf32>
    %c1_i32_59 = arith.constant 1 : i32
    %134 = tpu.dynamic_rotate %129 by %c1_i32_59 dim 1 : vector<32x4xf32>, i32 -> vector<32x4xf32>
    %c1_i32_60 = arith.constant 1 : i32
    %135 = vector.broadcast %c1_i32_60 : i32 to vector<1x4xi32>
    %136 = arith.cmpi slt, %33, %135 : vector<1x4xi32>
    %cst_61 = arith.constant 0.000000e+00 : f32
    %137 = vector.shape_cast %136 : vector<1x4xi1> to vector<1x4xi1>
    %138 = vector.broadcast %137 : vector<1x4xi1> to vector<32x4xi1>
    %139 = vector.broadcast %cst_61 : f32 to vector<32x4xf32>
    %140 = arith.select %138, %139, %134 : vector<32x4xi1>, vector<32x4xf32>
    %c3_i32 = arith.constant 3 : i32
    %141 = tpu.dynamic_rotate %129 by %c3_i32 dim 1 : vector<32x4xf32>, i32 -> vector<32x4xf32>
    %c3_i32_62 = arith.constant 3 : i32
    %142 = vector.broadcast %c3_i32_62 : i32 to vector<1x4xi32>
    %143 = arith.cmpi sge, %33, %142 : vector<1x4xi32>
    %cst_63 = arith.constant 0.000000e+00 : f32
    %144 = vector.shape_cast %143 : vector<1x4xi1> to vector<1x4xi1>
    %145 = vector.broadcast %144 : vector<1x4xi1> to vector<32x4xi1>
    %146 = vector.broadcast %cst_63 : f32 to vector<32x4xf32>
    %147 = arith.select %145, %146, %141 : vector<32x4xi1>, vector<32x4xf32>
    %148 = tpu.concatenate %140, %129, %147 in 0 : vector<32x4xf32>, vector<32x4xf32>, vector<32x4xf32> -> vector<96x4xf32>
    %149 = arith.truncf %148 : vector<96x4xf32> to vector<96x4xbf16>
    %cst_64 = arith.constant dense<0.000000e+00> : vector<32x4xf32>
    %150 = tpu.matmul %131, %149, %cst_64 {dimension_numbers = #tpu.dot_dimension_numbers<[1], [0], [0], [1], [0, 0, 1, 1], [], []>} : vector<32x96xbf16>, vector<96x4xbf16>, vector<32x4xf32> -> vector<32x4xf32>
    %151 = vector.broadcast %133 : vector<32x1xf32> to vector<32x4xf32>
    %152 = arith.addf %150, %151 : vector<32x4xf32>
    %cst_65 = arith.constant 0.000000e+00 : f32
    %153 = vector.broadcast %cst_65 : f32 to vector<32x4xf32>
    %154 = arith.maximumf %152, %153 : vector<32x4xf32>
    %c1_66 = arith.constant 1 : index
    %c0_67 = arith.constant 0 : index
    %c0_68 = arith.constant 0 : index
    %155 = vector.load %arg7[%c1_66, %c0_67, %c0_68] : memref<2x32x96xbf16, #tpu.memory_space<vmem>>, vector<1x32x96xbf16>
    %156 = vector.shape_cast %155 : vector<1x32x96xbf16> to vector<32x96xbf16>
    %c1_69 = arith.constant 1 : index
    %c0_70 = arith.constant 0 : index
    %c0_71 = arith.constant 0 : index
    %157 = vector.load %arg8[%c1_69, %c0_70, %c0_71] : memref<2x32x1xf32, #tpu.memory_space<vmem>>, vector<1x32x1xf32>
    %158 = vector.shape_cast %157 : vector<1x32x1xf32> to vector<32x1xf32>
    %c1_i32_72 = arith.constant 1 : i32
    %159 = tpu.dynamic_rotate %154 by %c1_i32_72 dim 1 : vector<32x4xf32>, i32 -> vector<32x4xf32>
    %c1_i32_73 = arith.constant 1 : i32
    %160 = vector.broadcast %c1_i32_73 : i32 to vector<1x4xi32>
    %161 = arith.cmpi slt, %33, %160 : vector<1x4xi32>
    %cst_74 = arith.constant 0.000000e+00 : f32
    %162 = vector.shape_cast %161 : vector<1x4xi1> to vector<1x4xi1>
    %163 = vector.broadcast %162 : vector<1x4xi1> to vector<32x4xi1>
    %164 = vector.broadcast %cst_74 : f32 to vector<32x4xf32>
    %165 = arith.select %163, %164, %159 : vector<32x4xi1>, vector<32x4xf32>
    %c3_i32_75 = arith.constant 3 : i32
    %166 = tpu.dynamic_rotate %154 by %c3_i32_75 dim 1 : vector<32x4xf32>, i32 -> vector<32x4xf32>
    %c3_i32_76 = arith.constant 3 : i32
    %167 = vector.broadcast %c3_i32_76 : i32 to vector<1x4xi32>
    %168 = arith.cmpi sge, %33, %167 : vector<1x4xi32>
    %cst_77 = arith.constant 0.000000e+00 : f32
    %169 = vector.shape_cast %168 : vector<1x4xi1> to vector<1x4xi1>
    %170 = vector.broadcast %169 : vector<1x4xi1> to vector<32x4xi1>
    %171 = vector.broadcast %cst_77 : f32 to vector<32x4xf32>
    %172 = arith.select %170, %171, %166 : vector<32x4xi1>, vector<32x4xf32>
    %173 = tpu.concatenate %165, %154, %172 in 0 : vector<32x4xf32>, vector<32x4xf32>, vector<32x4xf32> -> vector<96x4xf32>
    %174 = arith.truncf %173 : vector<96x4xf32> to vector<96x4xbf16>
    %cst_78 = arith.constant dense<0.000000e+00> : vector<32x4xf32>
    %175 = tpu.matmul %156, %174, %cst_78 {dimension_numbers = #tpu.dot_dimension_numbers<[1], [0], [0], [1], [0, 0, 1, 1], [], []>} : vector<32x96xbf16>, vector<96x4xbf16>, vector<32x4xf32> -> vector<32x4xf32>
    %176 = vector.broadcast %158 : vector<32x1xf32> to vector<32x4xf32>
    %177 = arith.addf %175, %176 : vector<32x4xf32>
    %cst_79 = arith.constant 0.000000e+00 : f32
    %178 = vector.broadcast %cst_79 : f32 to vector<32x4xf32>
    %179 = arith.maximumf %177, %178 : vector<32x4xf32>
    %c1_i32_80 = arith.constant 1 : i32
    %180 = tpu.dynamic_rotate %179 by %c1_i32_80 dim 1 : vector<32x4xf32>, i32 -> vector<32x4xf32>
    %c1_i32_81 = arith.constant 1 : i32
    %181 = vector.broadcast %c1_i32_81 : i32 to vector<1x4xi32>
    %182 = arith.cmpi slt, %33, %181 : vector<1x4xi32>
    %cst_82 = arith.constant 0.000000e+00 : f32
    %183 = vector.shape_cast %182 : vector<1x4xi1> to vector<1x4xi1>
    %184 = vector.broadcast %183 : vector<1x4xi1> to vector<32x4xi1>
    %185 = vector.broadcast %cst_82 : f32 to vector<32x4xf32>
    %186 = arith.select %184, %185, %180 : vector<32x4xi1>, vector<32x4xf32>
    %c3_i32_83 = arith.constant 3 : i32
    %187 = tpu.dynamic_rotate %179 by %c3_i32_83 dim 1 : vector<32x4xf32>, i32 -> vector<32x4xf32>
    %c3_i32_84 = arith.constant 3 : i32
    %188 = vector.broadcast %c3_i32_84 : i32 to vector<1x4xi32>
    %189 = arith.cmpi sge, %33, %188 : vector<1x4xi32>
    %cst_85 = arith.constant 0.000000e+00 : f32
    %190 = vector.shape_cast %189 : vector<1x4xi1> to vector<1x4xi1>
    %191 = vector.broadcast %190 : vector<1x4xi1> to vector<32x4xi1>
    %192 = vector.broadcast %cst_85 : f32 to vector<32x4xf32>
    %193 = arith.select %191, %192, %187 : vector<32x4xi1>, vector<32x4xf32>
    %194 = tpu.concatenate %186, %179, %193 in 0 : vector<32x4xf32>, vector<32x4xf32>, vector<32x4xf32> -> vector<96x4xf32>
    %c0_86 = arith.constant 0 : index
    %c0_87 = arith.constant 0 : index
    %195 = vector.load %arg9[%c0_86, %c0_87] : memref<1x96xbf16, #tpu.memory_space<vmem>>, vector<1x96xbf16>
    %196 = arith.truncf %194 : vector<96x4xf32> to vector<96x4xbf16>
    %cst_88 = arith.constant dense<0.000000e+00> : vector<1x4xf32>
    %197 = tpu.matmul %195, %196, %cst_88 {dimension_numbers = #tpu.dot_dimension_numbers<[1], [0], [0], [1], [0, 0, 1, 1], [], []>} : vector<1x96xbf16>, vector<96x4xbf16>, vector<1x4xf32> -> vector<1x4xf32>
    %c0_89 = arith.constant 0 : index
    %c0_90 = arith.constant 0 : index
    %198 = vector.load %arg10[%c0_89, %c0_90] : memref<1x1xf32, #tpu.memory_space<vmem>>, vector<1x1xf32>
    %199 = vector.broadcast %198 : vector<1x1xf32> to vector<1x4xf32>
    %200 = arith.addf %197, %199 : vector<1x4xf32>
    %c0_91 = arith.constant 0 : index
    %c0_92 = arith.constant 0 : index
    %c0_93 = arith.constant 0 : index
    %201 = vector.load %arg11[%c0_91, %c0_92, %c0_93] : memref<1x1x4xf32, #tpu.memory_space<vmem>>, vector<1x1x4xf32>
    %202 = vector.shape_cast %201 : vector<1x1x4xf32> to vector<1x4xf32>
    %203 = vector.shape_cast %200 : vector<1x4xf32> to vector<1x1x4xf32>
    tpu.vector_store %arg11[%c0_91, %c0_92, %c0_93], %203 {strides = array<i32>} : memref<1x1x4xf32, #tpu.memory_space<vmem>>, vector<1x1x4xf32>,
    return
  }
  func.func @transform_0(%arg0: i32) -> (i32, i32, i32) {
    %c0_i32 = arith.constant 0 : i32
    %c0_i32_0 = arith.constant 0 : i32
    %c0_i32_1 = arith.constant 0 : i32
    return %arg0, %c0_i32, %c0_i32_0 : i32, i32, i32
  }
  func.func @transform_1(%arg0: i32) -> (i32, i32, i32) {
    %c0_i32 = arith.constant 0 : i32
    %c0_i32_0 = arith.constant 0 : i32
    %c0_i32_1 = arith.constant 0 : i32
    return %arg0, %c0_i32, %c0_i32_0 : i32, i32, i32
  }
  func.func @transform_2(%arg0: i32) -> (i32, i32) {
    %c0_i32 = arith.constant 0 : i32
    %c0_i32_0 = arith.constant 0 : i32
    %c0_i32_1 = arith.constant 0 : i32
    return %c0_i32, %c0_i32_0 : i32, i32
  }
  func.func @transform_3(%arg0: i32) -> (i32, i32) {
    %c0_i32 = arith.constant 0 : i32
    %c0_i32_0 = arith.constant 0 : i32
    %c0_i32_1 = arith.constant 0 : i32
    return %c0_i32, %c0_i32_0 : i32, i32
  }
  func.func @transform_4(%arg0: i32) -> (i32, i32, i32) {
    %c0_i32 = arith.constant 0 : i32
    %c0_i32_0 = arith.constant 0 : i32
    %c0_i32_1 = arith.constant 0 : i32
    %c0_i32_2 = arith.constant 0 : i32
    return %c0_i32, %c0_i32_0, %c0_i32_1 : i32, i32, i32
  }
  func.func @transform_5(%arg0: i32) -> (i32, i32, i32) {
    %c0_i32 = arith.constant 0 : i32
    %c0_i32_0 = arith.constant 0 : i32
    %c0_i32_1 = arith.constant 0 : i32
    %c0_i32_2 = arith.constant 0 : i32
    return %c0_i32, %c0_i32_0, %c0_i32_1 : i32, i32, i32
  }
  func.func @transform_6(%arg0: i32) -> (i32, i32, i32) {
    %c0_i32 = arith.constant 0 : i32
    %c0_i32_0 = arith.constant 0 : i32
    %c0_i32_1 = arith.constant 0 : i32
    %c0_i32_2 = arith.constant 0 : i32
    return %c0_i32, %c0_i32_0, %c0_i32_1 : i32, i32, i32
  }
  func.func @transform_7(%arg0: i32) -> (i32, i32, i32) {
    %c0_i32 = arith.constant 0 : i32
    %c0_i32_0 = arith.constant 0 : i32
    %c0_i32_1 = arith.constant 0 : i32
    %c0_i32_2 = arith.constant 0 : i32
    return %c0_i32, %c0_i32_0, %c0_i32_1 : i32, i32, i32
  }
  func.func @transform_8(%arg0: i32) -> (i32, i32) {
    %c0_i32 = arith.constant 0 : i32
    %c0_i32_0 = arith.constant 0 : i32
    %c0_i32_1 = arith.constant 0 : i32
    return %c0_i32, %c0_i32_0 : i32, i32
  }
  func.func @transform_9(%arg0: i32) -> (i32, i32) {
    %c0_i32 = arith.constant 0 : i32
    %c0_i32_0 = arith.constant 0 : i32
    %c0_i32_1 = arith.constant 0 : i32
    return %c0_i32, %c0_i32_0 : i32, i32
  }
  func.func @transform_10(%arg0: i32) -> (i32, i32, i32) {
    %c0_i32 = arith.constant 0 : i32
    %c0_i32_0 = arith.constant 0 : i32
    %c0_i32_1 = arith.constant 0 : i32
    return %arg0, %c0_i32, %c0_i32_0 : i32, i32, i32
  }
}

</mosaic_0001>

<bundles_post_ra>
// kernel: model_forward.1
= control target key start
LH: loop header
LB: loop body
LE: loop exit
PB: predicated region body
PF: predicated region fallthrough
CT: control target
= control target key end

     0   :  { %s2261_s0 = inlined_call_operand.vmem [shape: f32[2,8,16], index: 0, kind: input, shape index: {}]   ;;  %s2262_s1 = inlined_call_operand.vmem [shape: s32[2,2,4], index: 1, kind: input, shape index: {}]   ;;  %s2263_s2 = inlined_call_operand.vmem [shape: bf16[32,24], index: 2, kind: input, shape index: {}]   ;;  %s2264_s3 = inlined_call_operand.vmem [shape: f32[32,1], index: 3, kind: input, shape index: {}]   ;;  %s2265_s4 = inlined_call_operand.vmem [shape: bf16[2,32,96], index: 4, kind: input, shape index: {}]   ;;  %s2266_s5 = inlined_call_operand.vmem [shape: f32[2,32,1], index: 5, kind: input, shape index: {}]   ;;  %s2267_s6 = inlined_call_operand.vmem [shape: bf16[2,32,96], index: 6, kind: input, shape index: {}]   ;;  %s2268_s7 = inlined_call_operand.vmem [shape: f32[2,32,1], index: 7, kind: input, shape index: {}]   ;;  %s2269_s8 = inlined_call_operand.vmem [shape: bf16[1,96], index: 8, kind: input, shape index: {}]   ;;  %s2270_s9 = inlined_call_operand.<no memory space> [shape: f32[1,1], index: 9, kind: input, shape index: {}]   ;;  %s2271_s10 = inlined_call_operand.hbm [shape: f32[2,1,4], index: 10, kind: output, shape index: {}]  }
   0x1   :  { %v15_v0 = vstv %s2270_s9 }
   0x2   :  { %16 = vst [vmem:[#allocation2] sm:$0x1] %v15_v0 }
   0x3   :  { %17 = vsyncpa [#allocation4], 0 }
   0x4   :  { %19 = vsyncpa [#allocation4 + $0x1], 0  ;;  %s1854_s15 = smov 0   ;;  %s1856_s16 = smov 0  }
   0x5   :  { %s1858_s17 = smov 0   ;;  %s1860_s18 = smov 0  }
   0x6 LB: > { %s1875_s9 = sadd.s32 4294967295, %s1786_s18   ;;  %s1276_s19 = sadd.s32 4294967294, %s1786_s18   ;;  %s1786_s18 = sphi %s1860_s18, %s2289_s18   ;;  %s1782_s17 = sphi %s1858_s17, %s2288_s17   ;;  %s1778_s16 = sphi %s1856_s16, %s2287_s16   ;;  %s1774_s15 = sphi %s1854_s15, %s2286_s15  }
   0x7   : > { %s1879_s20 = sadd.s32 1, %s1786_s18   ;;  %s252_s21 = sadd.s32 1, %s1782_s17 }
   0x8   : > { %s249_s22 = ssub.s32 %s1786_s18, %s1879_s20  ;;  %p262_p0 = scmp.ne.s32.totalorder %s1782_s17, %s1778_s16 }
   0x9   : > { %p250_p1 = scmp.eq.s32.totalorder %s249_s22, 0  ;;  %p263_p2 = scmp.eq.s32.totalorder %s1875_s9, 1 }
   0xa   : > { %p268_p3 = scmp.ne.s32.totalorder %s1778_s16, %s1774_s15  ;;  %p269_p4 = scmp.eq.s32.totalorder %s1276_s19, 1 }
   0xb   : > { %s1890_s23 = scalar_select %p250_p1, %s1782_s17, %s252_s21  }
   0xc   : > { %p1892_p5 = por %p263_p2, %p262_p0  ;;  %p1896_p6 = por %p269_p4, %p268_p3 }
   0xd   : > { %p1279_p7 = scmp.ge.s32.totalorder %s1786_s18, 1  ;;  %p325_p8 = scmp.lt.s32.totalorder %s1786_s18, 3 }
   0xf   : > { %p326_p9 = pnand %p1279_p7, %p325_p8 }
  0x10   : > { %p365_p10 = scmp.lt.s32.totalorder (!%p326_p9), %s1875_s9, 1  ;;  %s1788_s11 = smov (!%p326_p9), 16  }
  0x11   : > { %329 = sbr.rel (%p326_p9) target bundleno = 3233 (0xca1), region = 60  ;;  %s1789_s12 = smov (!%p326_p9), 127  }
  0x12   : > { %s1790_s13 = smov (!%p326_p9), 113   ;;  %s1795_s28 = smov (!%p326_p9), 125  }
  0x16   : > { %s1904_s26 = scalar_select %p365_p10, %s1875_s9, 1  ;;  %vm409_vm0 = vcmask 1047680   ;;  %v405_v6 = vld [vmem:[%s2264_s3] sm:$0xff]  ;;  %v1791_v7 = vmov 0   ;;  %v374_v8 = vlaneseq  ;;  %v406_v12 = vld [vmem:[%s2264_s3 + $0x8] sm:$0xff]  ;;  %v407_v13 = vld [vmem:[%s2264_s3 + $0x10] sm:$0xff] }
  0x17   : > { %1520 = vset.pattern.permute.xlu0 %v1791_v7  ;;  %1521 = vset.pattern.permute.xlu1 %v1791_v7  ;;  %vm470_vm2 = vcmask 1043456   ;;  %v408_v18 = vld [vmem:[%s2264_s3 + $0x18] sm:$0xff]  ;;  %vm1792_vm4 = vmmov 1   ;;  %v1459_v22 = vld [vmem:[%s2263_s2] sm:$0xff]  ;;  %vm463_vm6 = vcmask 195584   ;;  %v1460_v23 = vld [vmem:[%s2263_s2 + $0x8] sm:$0xff] }
  0x18   : > { %s1280_s27 = sshll.u32 %s1904_s26, 3  ;;  %1519 = vset.pattern.permute.xlu2 %v1791_v7  ;;  %v1920_v9 = vand.u32 127, %v374_v8  ;;  %v500_v56 = vld [vmem:[%s2266_s5 + $0x18] sm:$0xff]  ;;  %v497_v63 = vld [vmem:[%s2266_s5] sm:$0xff]  ;;  %v499_v0 = vld [vmem:[%s2266_s5 + $0x10] sm:$0xff]  ;;  %vm597_vm10 = vcmask 785408  }
  0x19   : > { %s368_s30 = scalar_lea.vmem %s2261_s0, %s1280_s27  ;;  %445 = vperm.xlu2 %1519, %v407_v13   ;;  %v1462_v19 = vld [vmem:[%s2265_s4 + $0x8] sm:$0xff] }
  0x1a   : > { %v400_v1 = vld [vmem:[%s368_s30] sm:$0xff]  ;;  %v380_v10 = vand.u32 15, %v1920_v9 }
  0x1b   : > { %410 = vrot.lane.b32.xlu0 %v400_v1, %s1788_s11 }
  0x1c   : > { %vm1923_vm1 = vcmp.ge.s32.totalorder %v380_v10, 15  ;;  %vm1938_vm3 = vcmp.ge.s32.totalorder %v380_v10, 1 }
  0x1d   : > { %vm1291_vm5 = vmpackc.low %vm1792_vm4, %vm1938_vm3 }
  0x1e   : > { %vm1304_vm7 = vmneg %vm1923_vm1 }
  0x1f   : > { %vm1990_vm8 = vmpackc.low %vm1304_vm7, %vm1304_vm7 }
  0x20   : > { %vm2003_vm9 = vmpackc.low %vm1938_vm3, %vm1938_vm3 }
  0x21   : > { %450 = vperm.xlu2 %1519, %v408_v18  }
  0x73   : > { %v446_v31 = vpop.permute.xlu2 %445 }
  0x7b   : > { %v451_v33 = vpop.permute.xlu2 %450 }
  0x8d   : > { %v411_v2 = vpop.permute.xlu0 %410 }
  0x8e   : > { %v412_v3 = vsel %vm409_vm0, %v411_v2, %v400_v1 }
  0x8f   : > { %413 = vrot.lane.b32.xlu0 %v412_v3, %s1788_s11 }
  0x97   : > { %435 = vperm.xlu0 %1520, %v405_v6  }
 0x101   : > { %v414_v4 = vpop.permute.xlu0 %413 }
 0x102   : > { %v415_v5 = vsel %vm409_vm0, %v414_v4, %v400_v1 }
 0x103   : > { %427 = vrot.lane.b32.xlu1 %v415_v5, %s1789_s12 }
 0x109   : > { %v436_v25 = vpop.permute.xlu0 %435 }
 0x10b   : > { %420 = vrot.lane.b32.xlu1 %v415_v5, %s1790_s13  ;;  %v1463_v5 = vld [vmem:[%s2265_s4 + $0x10] sm:$0xff] }
 0x113   : > { %440 = vperm.xlu1 %1521, %v406_v12  }
 0x175   : > { %v428_v14 = vpop.permute.xlu1 %427 }
 0x176   : > { %v430_v15 = vsel %vm1923_vm1, 0.0, %v428_v14 }
 0x177   : > { %v432_v16 = vpack.c.bf16 %v430_v15, %v430_v15 }
 0x179   : > { %v472_v17 = vsel %vm470_vm2, %v432_v16, 0  ;;  %vm779_vm2 = vcmask 130048  }
 0x17a   : > { %480 = vmatpush.bf16.msra.mxu0 %v472_v17 }
 0x17d   : > { %v421_v20 = vpop.permute.xlu1 %420 }
 0x17e   : > { %v1292_v21 = vpack.c.bf16 %v400_v1, %v421_v20  ;;  %v498_v1 = vld [vmem:[%s2266_s5 + $0x8] sm:$0xff] }
 0x180   : > { %1293 = vmatpush.bf16.msk.msra.mxu0 %vm1291_vm5, %v1292_v21 }
 0x183   : > { %1294 = vmatmul.msk.bf16.vlgmr.msra.gmra.mxu0 %vm463_vm6, %v1459_v22 }
 0x185   : > { %v441_v26 = vpop.permute.xlu1 %440 }
 0x193   : > { %1295 = vmatmul.msk.bf16.gmra.mxu0 %vm463_vm6, %v1460_v23 }
 0x200   : > { %v483_v24 = vpop.f32.mrf.mxu0 }
 0x201   : > { %v1950_v28 = vadd.f32 %v483_v24, %v436_v25  ;;  %v1461_v25 = vld [vmem:[%s2265_s4] sm:$0xff] }
 0x208   : > { %v485_v27 = vpop.f32.mrf.mxu0 }
 0x209   : > { %v1952_v29 = vadd.f32 %v485_v27, %v441_v26 }
 0x20b   : > { %v1527_v30 = vpack.i.bf16 %v1952_v29, %v1950_v28  ;;  %v563_v17 = vpack.c.bf16 %v1952_v29, %v1950_v28 }
 0x20d   : > { %1528 = vrot.lane.b32.xlu1 %v1527_v30, %s1788_s11 }
 0x210   : > { %v488_v32 = vpop.f32.mrf.mxu0 }
 0x211   : > { %v489_v34 = vadd.f32 %v488_v32, %v446_v31 }
 0x218   : > { %v490_v35 = vpop.f32.mrf.mxu0 }
 0x219   : > { %v491_v36 = vadd.f32 %v490_v35, %v451_v33 }
 0x21b   : > { %v1522_v37 = vpack.i.bf16 %v491_v36, %v489_v34  ;;  %v564_v11 = vpack.c.bf16 %v491_v36, %v489_v34 }
 0x21d   : > { %1523 = vrot.lane.b32.xlu2 %v1522_v37, %s1788_s11 }
 0x277   : > { %v1524_v38 = vpop.permute.xlu2 %1523 }
 0x278   : > { %v1526_v39 = vunpack.i.h.bf16 %v1524_v38  ;;  %v1525_v40 = vunpack.i.l.bf16 %v1524_v38 }
 0x27a   : > { %v509_v41 = vsel %vm409_vm0, %v1525_v40, %v489_v34  ;;  %v512_v42 = vsel %vm409_vm0, %v1526_v39, %v491_v36 }
 0x27b   : > { %v1532_v43 = vpack.i.bf16 %v512_v42, %v509_v41 }
 0x27d   : > { %1533 = vrot.lane.b32.xlu2 %v1532_v43, %s1788_s11 }
 0x27f   : > { %v1529_v44 = vpop.permute.xlu1 %1528 }
 0x280   : > { %v1531_v45 = vunpack.i.h.bf16 %v1529_v44  ;;  %v1530_v46 = vunpack.i.l.bf16 %v1529_v44 }
 0x282   : > { %v503_v47 = vsel %vm409_vm0, %v1530_v46, %v1950_v28  ;;  %v506_v48 = vsel %vm409_vm0, %v1531_v45, %v1952_v29 }
 0x283   : > { %v1537_v49 = vpack.i.bf16 %v506_v48, %v503_v47 }
 0x285   : > { %1538 = vrot.lane.b32.xlu0 %v1537_v49, %s1788_s11 }
 0x2d7   : > { %v1534_v50 = vpop.permute.xlu2 %1533 }
 0x2d8   : > { %v1536_v51 = vunpack.i.h.bf16 %v1534_v50  ;;  %v1535_v52 = vunpack.i.l.bf16 %v1534_v50 }
 0x2da   : > { %v523_v53 = vsel %vm409_vm0, %v1535_v52, %v489_v34  ;;  %v524_v54 = vsel %vm409_vm0, %v1536_v51, %v491_v36 }
 0x2db   : > { %v1542_v55 = vpack.i.bf16 %v524_v54, %v523_v53 }
 0x2dd   : > { %1543 = vrot.lane.b32.xlu1 %v1542_v55, %s1789_s12  ;;  %1553 = vrot.lane.b32.xlu0 %v1542_v55, %s1790_s13 }
 0x2e5   : > { %584 = vperm.xlu0 %1520, %v500_v56  }
 0x2f7   : > { %v1539_v57 = vpop.permute.xlu0 %1538 }
 0x2f8   : > { %v1541_v58 = vunpack.i.h.bf16 %v1539_v57  ;;  %v1540_v59 = vunpack.i.l.bf16 %v1539_v57 }
 0x2fa   : > { %v521_v60 = vsel %vm409_vm0, %v1540_v59, %v1950_v28  ;;  %v522_v61 = vsel %vm409_vm0, %v1541_v58, %v1952_v29 }
 0x2fb   : > { %v1557_v62 = vpack.i.bf16 %v522_v61, %v521_v60 }
 0x2fd   : > { %1558 = vrot.lane.b32.xlu1 %v1557_v62, %s1790_s13  ;;  %1548 = vrot.lane.b32.xlu2 %v1557_v62, %s1789_s12 }
 0x305   : > { %569 = vperm.xlu1 %1521, %v497_v63   ;;  %579 = vperm.xlu2 %1519, %v499_v0  }
 0x30d   : > { %574 = vperm.xlu2 %1519, %v498_v1   ;;  %v1331_v1 = vld [vmem:[%s2266_s5 + $0x28] sm:$0xff] }
 0x34f   : > { %v1544_v2 = vpop.permute.xlu1 %1543  ;;  %v1554_v14 = vpop.permute.xlu0 %1553 }
 0x350   : > { %v1546_v3 = vunpack.i.h.bf16 %v1544_v2  ;;  %v1545_v4 = vunpack.i.l.bf16 %v1544_v2  ;;  %v1556_v15 = vunpack.i.h.bf16 %v1554_v14  ;;  %v1555_v16 = vunpack.i.l.bf16 %v1554_v14 }
 0x352   : > { %v1307_v6 = vpack.c.bf16 %v1546_v3, %v1545_v4  ;;  %v1317_v20 = vpack.c.bf16 %v1556_v15, %v1555_v16 }
 0x354   : > { %1308 = vmatpush.bf16.msk.msra.mxu1 %vm1990_vm8, %v1307_v6  ;;  %v1332_v6 = vld [vmem:[%s2266_s5 + $0x30] sm:$0xff] }
 0x357   : > { %v1549_v7 = vpop.permute.xlu2 %1548  ;;  %v585_v38 = vpop.permute.xlu0 %584 }
 0x358   : > { %v1551_v10 = vunpack.i.h.bf16 %v1549_v7  ;;  %v1550_v12 = vunpack.i.l.bf16 %v1549_v7  ;;  %v1330_v7 = vld [vmem:[%s2266_s5 + $0x20] sm:$0xff] }
 0x35a   : > { %v1312_v13 = vpack.c.bf16 %v1551_v10, %v1550_v12  ;;  %v1333_v10 = vld [vmem:[%s2266_s5 + $0x38] sm:$0xff] }
 0x35c   : > { %1313 = vmatpush.bf16.msk.msra.mxu1 %vm1990_vm8, %v1312_v13 }
 0x35f   : > { %v580_v26 = vpop.permute.xlu2 %579 }
 0x360   : > { %608 = vmatpush.bf16.msra.mxu1 %v564_v11 }
 0x364   : > { %609 = vmatpush.bf16.msra.mxu1 %v563_v17 }
 0x367   : > { %v575_v30 = vpop.permute.xlu2 %574 }
 0x368   : > { %1318 = vmatpush.bf16.msk.msra.mxu1 %vm2003_vm9, %v1317_v20 }
 0x36f   : > { %v1559_v21 = vpop.permute.xlu1 %1558 }
 0x370   : > { %v1561_v22 = vunpack.i.h.bf16 %v1559_v21  ;;  %v1560_v23 = vunpack.i.l.bf16 %v1559_v21 }
 0x372   : > { %v1322_v24 = vpack.c.bf16 %v1561_v22, %v1560_v23 }
 0x374   : > { %1323 = vmatpush.bf16.msk.msra.mxu1 %vm2003_vm9, %v1322_v24 }
 0x377   : > { %1324 = vmatmul.msk.bf16.vlgmr.msra.gmra.mxu1 %vm597_vm10, %v1461_v25  ;;  %v570_v28 = vpop.permute.xlu1 %569 }
 0x387   : > { %1325 = vmatmul.msk.bf16.gmra.mxu1 %vm597_vm10, %v1462_v19 }
 0x3f4   : > { %v613_v27 = vpop.f32.mrf.mxu1 }
 0x3f5   : > { %v614_v29 = vadd.f32 %v613_v27, %v570_v28 }
 0x3f7   : > { %v2019_v33 = vmax.f32 %v614_v29, 0.0 }
 0x3fc   : > { %v615_v31 = vpop.f32.mrf.mxu1 }
 0x3fd   : > { %v616_v32 = vadd.f32 %v615_v31, %v575_v30  ;;  %v1464_v30 = vld [vmem:[%s2265_s4 + $0x18] sm:$0xff]  ;;  %v764_v31 = vshrl.u32 %v374_v8, 7 }
 0x3ff   : > { %v2021_v34 = vmax.f32 %v616_v32, 0.0 }
 0x401   : > { %v1567_v35 = vpack.i.bf16 %v2021_v34, %v2019_v33  ;;  %v699_v25 = vpack.c.bf16 %v2021_v34, %v2019_v33 }
 0x403   : > { %1568 = vrot.lane.b32.xlu1 %v1567_v35, %s1788_s11  ;;  %v1793_v35 = vmov 1.0|1.0  }
 0x404   : > { %v618_v36 = vpop.f32.mrf.mxu1 }
 0x405   : > { %v619_v37 = vadd.f32 %v618_v36, %v580_v26 }
 0x407   : > { %v625_v41 = vmax.f32 %v619_v37, 0.0 }
 0x40c   : > { %v620_v39 = vpop.f32.mrf.mxu1 }
 0x40d   : > { %v621_v40 = vadd.f32 %v620_v39, %v585_v38 }
 0x40f   : > { %v626_v42 = vmax.f32 %v621_v40, 0.0 }
 0x411   : > { %v1562_v43 = vpack.i.bf16 %v626_v42, %v625_v41  ;;  %v700_v21 = vpack.c.bf16 %v626_v42, %v625_v41 }
 0x413   : > { %1563 = vrot.lane.b32.xlu0 %v1562_v43, %s1788_s11 }
 0x475   : > { %v1569_v44 = vpop.permute.xlu1 %1568 }
 0x476   : > { %v1571_v45 = vunpack.i.h.bf16 %v1569_v44  ;;  %v1570_v46 = vunpack.i.l.bf16 %v1569_v44 }
 0x478   : > { %v639_v47 = vsel %vm409_vm0, %v1570_v46, %v2019_v33  ;;  %v642_v48 = vsel %vm409_vm0, %v1571_v45, %v2021_v34 }
 0x479   : > { %v1577_v49 = vpack.i.bf16 %v642_v48, %v639_v47 }
 0x47b   : > { %1578 = vrot.lane.b32.xlu0 %v1577_v49, %s1788_s11 }
 0x485   : > { %v1564_v50 = vpop.permute.xlu0 %1563 }
 0x486   : > { %v1566_v51 = vunpack.i.h.bf16 %v1564_v50  ;;  %v1565_v52 = vunpack.i.l.bf16 %v1564_v50 }
 0x488   : > { %v645_v53 = vsel %vm409_vm0, %v1565_v52, %v625_v41  ;;  %v648_v54 = vsel %vm409_vm0, %v1566_v51, %v626_v42 }
 0x489   : > { %v1572_v55 = vpack.i.bf16 %v648_v54, %v645_v53 }
 0x48b   : > { %1573 = vrot.lane.b32.xlu2 %v1572_v55, %s1788_s11  ;;  %s1281_s11 = sshll.u32 %s1904_s26, 1  ;;  %s1794_s26 = smov 4  }
 0x48c   : > { %s372_s27 = scalar_lea.vmem %s2262_s1, %s1281_s11 }
 0x48d   : > { %v762_v32 = vld [vmem:[%s372_s27] sm:$0x3]  ;;  %s1205_s27 = scalar_lea.hbm %s2271_s10, %s1875_s9 }
 0x48e   : > { %v769_v18 = vperm.slane %v762_v32, 1  ;;  %v805_v53 = vrot.slane %v762_v32, 7  ;;  %s1209_s30 = sshll.u32 %s1205_s27, 4  ;;  %s1210_s30 = int_to_ptr.hbm [resolvable:$true] %s1209_s30 }
 0x48f   : > { %s1738_s19 = sshra.s32 %s1210_s30, 4  ;;  %s1739_s19 = int_to_ptr.hbm [resolvable:$true] %s1738_s19 }
 0x490   : > { %vm770_vm13 = vcmp.lt.s32.totalorder %v764_v31, %v769_v18  ;;  %v806_v54 = vsub.s32 %v762_v32, %v805_v53  ;;  %s1740_s11 = scalar_lea.hbm %s1739_s19, 1  ;;  %p1745_p0 = scmp.lt.s32.totalorder %s1739_s19, %s2271_s10 }
 0x491   : > { %p1741_p11 = scmp.ne.s32.totalorder %s1739_s19, %s1740_s11 }
 0x492   : > { %vm807_vm3 = vcmp.gt.s32.totalorder %v806_v54, 1 }
 0x493   : > { %v808_v55 = vsel %vm807_vm3, %v806_v54, 1  ;;  %p1742_p12 = pnand %p1741_p11, %p1892_p5 }
 0x495   : > { %p1743_p13 = pneg %p1742_p12 }
 0x4e5   : > { %v1574_v56 = vpop.permute.xlu2 %1573 }
 0x4e6   : > { %v1576_v57 = vunpack.i.h.bf16 %v1574_v56  ;;  %v1575_v58 = vunpack.i.l.bf16 %v1574_v56  ;;  %v809_v56 = vcvt.s32.f32 %v808_v55 }
 0x4e8   : > { %v659_v59 = vsel %vm409_vm0, %v1575_v58, %v625_v41  ;;  %v660_v60 = vsel %vm409_vm0, %v1576_v57, %v626_v42  ;;  %1722 = vrcp.f32 %v809_v56  ;;  %vm815_vm4 = vweird.f32 %v809_v56 }
 0x4e9   : > { %v1582_v61 = vpack.i.bf16 %v660_v60, %v659_v59 }
 0x4eb   : > { %1583 = vrot.lane.b32.xlu1 %v1582_v61, %s1789_s12  ;;  %1593 = vrot.lane.b32.xlu0 %v1582_v61, %s1790_s13  ;;  %v821_v61 = vand.u32 2147483648, %v809_v56 }
 0x4ed   : > { %v1579_v62 = vpop.permute.xlu0 %1578 }
 0x4ee   : > { %v1581_v63 = vunpack.i.h.bf16 %v1579_v62  ;;  %v1580_v0 = vunpack.i.l.bf16 %v1579_v62  ;;  %v1723_v57 = vpop.eup %1722 }
 0x4ef   : > { %v811_v58 = vmul.f32 %v1723_v57, %v809_v56  ;;  %vm816_vm5 = vweird.f32 %v1723_v57 }
 0x4f0   : > { %v657_v2 = vsel %vm409_vm0, %v1580_v0, %v2019_v33  ;;  %v658_v3 = vsel %vm409_vm0, %v1581_v63, %v2021_v34  ;;  %v765_v33 = vadd.s32 8, %v764_v31  ;;  %v766_v34 = vperm.slane %v762_v32, 0  ;;  %vm817_vm6 = vmor %vm815_vm4, %vm816_vm5 }
 0x4f1   : > { %v1597_v4 = vpack.i.bf16 %v658_v3, %v657_v2  ;;  %v812_v59 = vsub.f32 1.0, %v811_v58  ;;  %v819_v63 = vand.u32 2147483647, %v809_v56  ;;  %v822_v0 = vor.u32 1.1754944e-38, %v821_v61 }
 0x4f2   : > { %vm767_vm11 = vcmp.ge.s32.totalorder %v764_v31, %v766_v34  ;;  %vm768_vm12 = vcmp.ge.s32.totalorder %v765_v33, %v766_v34  ;;  %vm771_vm14 = vcmp.lt.s32.totalorder %v765_v33, %v769_v18 }
 0x4f3   : > { %710 = vperm.xlu0 %1520, %v1331_v1   ;;  %1598 = vrot.lane.b32.xlu1 %v1597_v4, %s1790_s13  ;;  %vm772_vm15 = vmand %vm767_vm11, %vm770_vm13  ;;  %v813_v60 = vmul.f32 %v1723_v57, %v812_v59  ;;  %vm820_vm7 = vcmp.eq.f32.partialorder %v819_v63, 8.507059e+37  ;;  %v1465_v63 = vld [vmem:[%s2267_s6] sm:$0xff] }
 0x4f4   : > { %1588 = vrot.lane.b32.xlu2 %v1597_v4, %s1789_s12  ;;  %vm773_vm0 = vmand %vm768_vm12, %vm771_vm14  ;;  %vm1194_vm14 = vcmask 24576  }
 0x4f5   : > { %vm1364_vm1 = vmpackc.low %vm773_vm0, %vm772_vm15  ;;  %v814_v62 = vadd.f32 %v1723_v57, %v813_v60 }
 0x4f6   : > { %1365 = vmatpush.bf16.msk.msra.mxu3 %vm1364_vm1, %v1793_v35 }
 0x4f7   : > { %v818_v1 = vsel %vm817_vm6, %v1723_v57, %v814_v62 }
 0x4f8   : > { %v823_v3 = vsel %vm820_vm7, %v822_v0, %v818_v1  ;;  %v1466_v0 = vld [vmem:[%s2267_s6 + $0x8] sm:$0xff] }
 0x4f9   : > { %v824_v4 = vperm.slane %v823_v3, 1 }
 0x4fb   : > { %715 = vperm.xlu1 %1521, %v1332_v6  }
 0x4fc   : > { %705 = vperm.xlu2 %1519, %v1330_v7  }
 0x504   : > { %720 = vperm.xlu2 %1519, %v1333_v10  }
 0x54e   : > { %v1589_v12 = vpop.permute.xlu2 %1588 }
 0x54f   : > { %v1591_v15 = vunpack.i.h.bf16 %v1589_v12  ;;  %v1590_v16 = vunpack.i.l.bf16 %v1589_v12 }
 0x551   : > { %v1350_v20 = vpack.c.bf16 %v1591_v15, %v1590_v16 }
 0x556   : > { %v706_v37 = vpop.permute.xlu2 %705 }
 0x55d   : > { %v1584_v13 = vpop.permute.xlu1 %1583  ;;  %v1594_v22 = vpop.permute.xlu0 %1593 }
 0x55e   : > { %v1586_v11 = vunpack.i.h.bf16 %v1584_v13  ;;  %v1585_v14 = vunpack.i.l.bf16 %v1584_v13  ;;  %v1596_v23 = vunpack.i.h.bf16 %v1594_v22  ;;  %v1595_v24 = vunpack.i.l.bf16 %v1594_v22  ;;  %v721_v47 = vpop.permute.xlu2 %720 }
 0x560   : > { %v1345_v17 = vpack.c.bf16 %v1586_v11, %v1585_v14  ;;  %v1355_v26 = vpack.c.bf16 %v1596_v23, %v1595_v24 }
 0x562   : > { %1346 = vmatpush.bf16.msk.msra.mxu2 %vm1990_vm8, %v1345_v17 }
 0x565   : > { %v1599_v19 = vpop.permute.xlu1 %1598  ;;  %v711_v39 = vpop.permute.xlu0 %710 }
 0x566   : > { %1351 = vmatpush.bf16.msk.msra.mxu2 %vm1990_vm8, %v1350_v20  ;;  %v1601_v27 = vunpack.i.h.bf16 %v1599_v19  ;;  %v1600_v28 = vunpack.i.l.bf16 %v1599_v19  ;;  %vm837_vm8 = vcmask 1047584  }
 0x568   : > { %v1360_v29 = vpack.c.bf16 %v1601_v27, %v1600_v28 }
 0x56a   : > { %743 = vmatpush.bf16.msra.mxu2 %v700_v21 }
 0x56d   : > { %v716_v45 = vpop.permute.xlu1 %715 }
 0x56e   : > { %744 = vmatpush.bf16.msra.mxu2 %v699_v25 }
 0x572   : > { %1356 = vmatpush.bf16.msk.msra.mxu2 %vm2003_vm9, %v1355_v26 }
 0x576   : > { %1361 = vmatpush.bf16.msk.msra.mxu2 %vm2003_vm9, %v1360_v29 }
 0x579   : > { %1362 = vmatmul.msk.bf16.vlgmr.msra.gmra.mxu2 %vm597_vm10, %v1463_v5 }
 0x589   : > { %1363 = vmatmul.msk.bf16.gmra.mxu2 %vm597_vm10, %v1464_v30 }
 0x5fc   : > { %v748_v36 = vpop.f32.mrf.mxu2 }
 0x5fd   : > { %v749_v38 = vadd.f32 %v748_v36, %v706_v37 }
 0x5ff   : > { %v758_v8 = vmax.f32 %v749_v38, 0.0 }
 0x604   : > { %v750_v40 = vpop.f32.mrf.mxu2 }
 0x605   : > { %v751_v41 = vadd.f32 %v750_v40, %v711_v39  ;;  %v836_v39 = vld [vmem:[%s2268_s7 + $0x18] sm:$0xff] }
 0x607   : > { %v759_v42 = vmax.f32 %v751_v41, 0.0  ;;  %v835_v41 = vld [vmem:[%s2268_s7 + $0x10] sm:$0xff] }
 0x609   : > { %v777_v43 = vpack.c.bf16 %v759_v42, %v758_v8  ;;  %v833_v8 = vld [vmem:[%s2268_s7] sm:$0xff]  ;;  %v834_v42 = vld [vmem:[%s2268_s7 + $0x8] sm:$0xff] }
 0x60b   : > { %1366 = vmatmul.msk.bf16.vlgmr.msra.gmra.mxu3 %vm779_vm2, %v777_v43  ;;  %v392_v43 = vand.u32 3, %v1920_v9 }
 0x60c   : > { %v753_v44 = vpop.f32.mrf.mxu2 }
 0x60d   : > { %v754_v46 = vadd.f32 %v753_v44, %v716_v45  ;;  %vm1470_vm9 = vcmp.lt.s32.totalorder %v392_v43, 3  ;;  %vm1471_vm12 = vcmp.ge.s32.totalorder %v392_v43, 1 }
 0x60e   : > { %vm2119_vm11 = vmpackc.low %vm1470_vm9, %vm1470_vm9 }
 0x60f   : > { %v760_v50 = vmax.f32 %v754_v46, 0.0  ;;  %vm2129_vm13 = vmpackc.low %vm1471_vm12, %vm1471_vm12 }
 0x614   : > { %v755_v48 = vpop.f32.mrf.mxu2 }
 0x615   : > { %v756_v49 = vadd.f32 %v755_v48, %v721_v47  ;;  %v1164_v48 = vld [vmem:[%s2269_s8] sm:$0x1] }
 0x617   : > { %v761_v51 = vmax.f32 %v756_v49, 0.0 }
 0x619   : > { %v778_v52 = vpack.c.bf16 %v761_v51, %v760_v50 }
 0x61b   : > { %1367 = vmatmul.msk.bf16.gmra.mxu3 %vm779_vm2, %v778_v52 }
 0x68e   : > { %v795_v2 = vpop.f32.mrf.mxu3 }
 0x68f   : > { %v2080_v7 = vmul.f32 %v824_v4, %v795_v2 }
 0x696   : > { %v797_v6 = vpop.f32.mrf.mxu3 }
 0x697   : > { %v2082_v10 = vmul.f32 %v824_v4, %v797_v6 }
 0x699   : > { %v1607_v12 = vpack.i.bf16 %v2082_v10, %v2080_v7  ;;  %v906_v56 = vpack.c.bf16 %v2082_v10, %v2080_v7 }
 0x69b   : > { %1608 = vrot.lane.b32.xlu1 %v1607_v12, %s1794_s26 }
 0x69e   : > { %v800_v13 = vpop.f32.mrf.mxu3 }
 0x69f   : > { %v827_v14 = vmul.f32 %v824_v4, %v800_v13 }
 0x6a6   : > { %v802_v11 = vpop.f32.mrf.mxu3 }
 0x6a7   : > { %v828_v15 = vmul.f32 %v824_v4, %v802_v11 }
 0x6a9   : > { %v1602_v16 = vpack.i.bf16 %v828_v15, %v827_v14  ;;  %v907_v9 = vpack.c.bf16 %v828_v15, %v827_v14 }
 0x6ab   : > { %1603 = vrot.lane.b32.xlu0 %v1602_v16, %s1794_s26 }
 0x70d   : > { %v1609_v17 = vpop.permute.xlu1 %1608 }
 0x70e   : > { %v1611_v20 = vunpack.i.h.bf16 %v1609_v17  ;;  %v1610_v21 = vunpack.i.l.bf16 %v1609_v17 }
 0x710   : > { %v840_v22 = vsel %vm837_vm8, %v1610_v21, %v2080_v7  ;;  %v843_v23 = vsel %vm837_vm8, %v1611_v20, %v2082_v10 }
 0x711   : > { %v1617_v24 = vpack.i.bf16 %v843_v23, %v840_v22 }
 0x713   : > { %1618 = vrot.lane.b32.xlu0 %v1617_v24, %s1794_s26 }
 0x71d   : > { %v1604_v25 = vpop.permute.xlu0 %1603 }
 0x71e   : > { %v1606_v19 = vunpack.i.h.bf16 %v1604_v25  ;;  %v1605_v26 = vunpack.i.l.bf16 %v1604_v25 }
 0x720   : > { %v846_v27 = vsel %vm837_vm8, %v1605_v26, %v827_v14  ;;  %v849_v28 = vsel %vm837_vm8, %v1606_v19, %v828_v15 }
 0x721   : > { %v1612_v29 = vpack.i.bf16 %v849_v28, %v846_v27 }
 0x723   : > { %1613 = vrot.lane.b32.xlu2 %v1612_v29, %s1794_s26 }
 0x77d   : > { %v1614_v5 = vpop.permute.xlu2 %1613 }
 0x77e   : > { %v1616_v30 = vunpack.i.h.bf16 %v1614_v5  ;;  %v1615_v31 = vunpack.i.l.bf16 %v1614_v5 }
 0x780   : > { %v860_v32 = vsel %vm837_vm8, %v1615_v31, %v827_v14  ;;  %v861_v33 = vsel %vm837_vm8, %v1616_v30, %v828_v15 }
 0x781   : > { %v1632_v34 = vpack.i.bf16 %v861_v33, %v860_v32 }
 0x783   : > { %1633 = vrot.lane.b32.xlu0 %v1632_v34, %s1795_s28  ;;  %1623 = vrot.lane.b32.xlu1 %v1632_v34, %s1789_s12 }
 0x785   : > { %v1619_v18 = vpop.permute.xlu0 %1618 }
 0x786   : > { %v1621_v35 = vunpack.i.h.bf16 %v1619_v18  ;;  %v1620_v36 = vunpack.i.l.bf16 %v1619_v18 }
 0x788   : > { %v858_v37 = vsel %vm837_vm8, %v1620_v36, %v2080_v7  ;;  %v859_v38 = vsel %vm837_vm8, %v1621_v35, %v2082_v10 }
 0x789   : > { %v1627_v40 = vpack.i.bf16 %v859_v38, %v858_v37 }
 0x78b   : > { %1628 = vrot.lane.b32.xlu2 %v1627_v40, %s1789_s12  ;;  %927 = vperm.xlu0 %1520, %v836_v39  }
 0x78c   : > { %1638 = vrot.lane.b32.xlu1 %v1627_v40, %s1795_s28 }
 0x793   : > { %922 = vperm.xlu2 %1519, %v835_v41  }
 0x794   : > { %912 = vperm.xlu1 %1521, %v833_v8   ;;  %v1405_v8 = vld [vmem:[%s2268_s7 + $0x38] sm:$0xff] }
 0x79b   : > { %917 = vperm.xlu2 %1519, %v834_v42  }
 0x7e5   : > { %v1629_v44 = vpop.permute.xlu2 %1628 }
 0x7e6   : > { %v1631_v49 = vunpack.i.h.bf16 %v1629_v44  ;;  %v1630_v50 = vunpack.i.l.bf16 %v1629_v44 }
 0x7e8   : > { %v1384_v52 = vpack.c.bf16 %v1631_v49, %v1630_v50 }
 0x7ed   : > { %v923_v1 = vpop.permute.xlu2 %922 }
 0x7f5   : > { %v1624_v45 = vpop.permute.xlu1 %1623  ;;  %v1634_v53 = vpop.permute.xlu0 %1633 }
 0x7f6   : > { %v1626_v46 = vunpack.i.h.bf16 %v1624_v45  ;;  %v1625_v47 = vunpack.i.l.bf16 %v1624_v45  ;;  %v1636_v54 = vunpack.i.h.bf16 %v1634_v53  ;;  %v1635_v55 = vunpack.i.l.bf16 %v1634_v53  ;;  %v918_v6 = vpop.permute.xlu2 %917  ;;  %v1402_v45 = vld [vmem:[%s2268_s7 + $0x20] sm:$0xff] }
 0x7f8   : > { %v1379_v51 = vpack.c.bf16 %v1626_v46, %v1625_v47  ;;  %v1389_v59 = vpack.c.bf16 %v1636_v54, %v1635_v55  ;;  %v1404_v46 = vld [vmem:[%s2268_s7 + $0x30] sm:$0xff]  ;;  %v1403_v47 = vld [vmem:[%s2268_s7 + $0x28] sm:$0xff] }
 0x7fa   : > { %1380 = vmatpush.bf16.msk.msrb.mxu3 %vm2119_vm11, %v1379_v51 }
 0x7fd   : > { %v928_v16 = vpop.permute.xlu0 %927 }
 0x7fe   : > { %1385 = vmatpush.bf16.msk.msrb.mxu3 %vm2119_vm11, %v1384_v52  ;;  %v1639_v57 = vpop.permute.xlu1 %1638 }
 0x7ff   : > { %v1641_v60 = vunpack.i.h.bf16 %v1639_v57  ;;  %v1640_v61 = vunpack.i.l.bf16 %v1639_v57 }
 0x801   : > { %v1394_v62 = vpack.c.bf16 %v1641_v60, %v1640_v61 }
 0x802   : > { %950 = vmatpush.bf16.msrb.mxu3 %v907_v9 }
 0x806   : > { %951 = vmatpush.bf16.msrb.mxu3 %v906_v56  ;;  %v913_v3 = vpop.permute.xlu1 %912 }
 0x80a   : > { %1390 = vmatpush.bf16.msk.msrb.mxu3 %vm2129_vm13, %v1389_v59 }
 0x80e   : > { %1395 = vmatpush.bf16.msk.msrb.mxu3 %vm2129_vm13, %v1394_v62 }
 0x811   : > { %1396 = vmatmul.msk.bf16.vlgmr.msrb.gmra.mxu3 %vm597_vm10, %v1465_v63 }
 0x821   : > { %1397 = vmatmul.msk.bf16.gmra.mxu3 %vm597_vm10, %v1466_v0 }
 0x894   : > { %v955_v2 = vpop.f32.mrf.mxu3 }
 0x895   : > { %v956_v4 = vadd.f32 %v955_v2, %v913_v3  ;;  %v1467_v3 = vld [vmem:[%s2267_s6 + $0x10] sm:$0xff] }
 0x897   : > { %v2145_v12 = vmax.f32 %v956_v4, 0.0  ;;  %v1468_v4 = vld [vmem:[%s2267_s6 + $0x18] sm:$0xff] }
 0x89c   : > { %v957_v7 = vpop.f32.mrf.mxu3 }
 0x89d   : > { %v958_v10 = vadd.f32 %v957_v7, %v918_v6 }
 0x89f   : > { %v2147_v13 = vmax.f32 %v958_v10, 0.0 }
 0x8a1   : > { %v1647_v11 = vpack.i.bf16 %v2147_v13, %v2145_v12  ;;  %v1041_v61 = vpack.c.bf16 %v2147_v13, %v2145_v12 }
 0x8a3   : > { %1648 = vrot.lane.b32.xlu1 %v1647_v11, %s1794_s26 }
 0x8a4   : > { %v960_v14 = vpop.f32.mrf.mxu3 }
 0x8a5   : > { %v961_v15 = vadd.f32 %v960_v14, %v923_v1 }
 0x8a7   : > { %v967_v21 = vmax.f32 %v961_v15, 0.0 }
 0x8ac   : > { %v962_v17 = vpop.f32.mrf.mxu3 }
 0x8ad   : > { %v963_v20 = vadd.f32 %v962_v17, %v928_v16 }
 0x8af   : > { %v968_v22 = vmax.f32 %v963_v20, 0.0 }
 0x8b1   : > { %v1642_v23 = vpack.i.bf16 %v968_v22, %v967_v21  ;;  %v1042_v56 = vpack.c.bf16 %v968_v22, %v967_v21 }
 0x8b3   : > { %1643 = vrot.lane.b32.xlu0 %v1642_v23, %s1794_s26 }
 0x915   : > { %v1649_v24 = vpop.permute.xlu1 %1648 }
 0x916   : > { %v1651_v25 = vunpack.i.h.bf16 %v1649_v24  ;;  %v1650_v19 = vunpack.i.l.bf16 %v1649_v24 }
 0x918   : > { %v981_v26 = vsel %vm837_vm8, %v1650_v19, %v2145_v12  ;;  %v984_v27 = vsel %vm837_vm8, %v1651_v25, %v2147_v13 }
 0x919   : > { %v1657_v28 = vpack.i.bf16 %v984_v27, %v981_v26 }
 0x91b   : > { %1658 = vrot.lane.b32.xlu0 %v1657_v28, %s1794_s26 }
 0x925   : > { %v1644_v29 = vpop.permute.xlu0 %1643 }
 0x926   : > { %v1646_v5 = vunpack.i.h.bf16 %v1644_v29  ;;  %v1645_v30 = vunpack.i.l.bf16 %v1644_v29 }
 0x928   : > { %v987_v31 = vsel %vm837_vm8, %v1645_v30, %v967_v21  ;;  %v990_v32 = vsel %vm837_vm8, %v1646_v5, %v968_v22 }
 0x929   : > { %v1652_v33 = vpack.i.bf16 %v990_v32, %v987_v31 }
 0x92b   : > { %1653 = vrot.lane.b32.xlu2 %v1652_v33, %s1794_s26 }
 0x985   : > { %v1654_v34 = vpop.permute.xlu2 %1653 }
 0x986   : > { %v1656_v18 = vunpack.i.h.bf16 %v1654_v34  ;;  %v1655_v35 = vunpack.i.l.bf16 %v1654_v34 }
 0x988   : > { %v1001_v36 = vsel %vm837_vm8, %v1655_v35, %v967_v21  ;;  %v1002_v37 = vsel %vm837_vm8, %v1656_v18, %v968_v22 }
 0x989   : > { %v1662_v38 = vpack.i.bf16 %v1002_v37, %v1001_v36 }
 0x98b   : > { %1663 = vrot.lane.b32.xlu1 %v1662_v38, %s1789_s12  ;;  %1673 = vrot.lane.b32.xlu0 %v1662_v38, %s1795_s28 }
 0x98d   : > { %v1659_v39 = vpop.permute.xlu0 %1658 }
 0x98e   : > { %v1661_v40 = vunpack.i.h.bf16 %v1659_v39  ;;  %v1660_v41 = vunpack.i.l.bf16 %v1659_v39 }
 0x990   : > { %v999_v42 = vsel %vm837_vm8, %v1660_v41, %v2145_v12  ;;  %v1000_v43 = vsel %vm837_vm8, %v1661_v40, %v2147_v13 }
 0x991   : > { %v1677_v44 = vpack.i.bf16 %v1000_v43, %v999_v42 }
 0x993   : > { %1062 = vperm.xlu0 %1520, %v1405_v8   ;;  %1678 = vrot.lane.b32.xlu1 %v1677_v44, %s1795_s28 }
 0x994   : > { %1668 = vrot.lane.b32.xlu2 %v1677_v44, %s1789_s12 }
 0x99b   : > { %1047 = vperm.xlu1 %1521, %v1402_v45  }
 0x99c   : > { %1057 = vperm.xlu2 %1519, %v1404_v46  }
 0x9a4   : > { %1052 = vperm.xlu2 %1519, %v1403_v47  }
 0x9ee   : > { %v1669_v49 = vpop.permute.xlu2 %1668 }
 0x9ef   : > { %v1671_v9 = vunpack.i.h.bf16 %v1669_v49  ;;  %v1670_v53 = vunpack.i.l.bf16 %v1669_v49  ;;  %v1171_v49 = vld [vmem:[#allocation2] sm:$0x1] }
 0x9f1   : > { %v1422_v55 = vpack.c.bf16 %v1671_v9, %v1670_v53 }
 0x9f6   : > { %v1058_v6 = vpop.permute.xlu2 %1057 }
 0x9fd   : > { %v1664_v50 = vpop.permute.xlu1 %1663  ;;  %v1674_v57 = vpop.permute.xlu0 %1673 }
 0x9fe   : > { %v1666_v51 = vunpack.i.h.bf16 %v1664_v50  ;;  %v1665_v52 = vunpack.i.l.bf16 %v1664_v50  ;;  %v1676_v59 = vunpack.i.h.bf16 %v1674_v57  ;;  %v1675_v60 = vunpack.i.l.bf16 %v1674_v57  ;;  %v1053_v13 = vpop.permute.xlu2 %1052 }
 0xa00   : > { %v1417_v54 = vpack.c.bf16 %v1666_v51, %v1665_v52  ;;  %v1427_v63 = vpack.c.bf16 %v1676_v59, %v1675_v60 }
 0xa02   : > { %1418 = vmatpush.bf16.msk.msrb.mxu0 %vm2119_vm11, %v1417_v54 }
 0xa05   : > { %v1679_v62 = vpop.permute.xlu1 %1678  ;;  %v1063_v22 = vpop.permute.xlu0 %1062 }
 0xa06   : > { %1423 = vmatpush.bf16.msk.msrb.mxu0 %vm2119_vm11, %v1422_v55  ;;  %v1681_v0 = vunpack.i.h.bf16 %v1679_v62  ;;  %v1680_v1 = vunpack.i.l.bf16 %v1679_v62 }
 0xa08   : > { %v1432_v2 = vpack.c.bf16 %v1681_v0, %v1680_v1 }
 0xa0a   : > { %1085 = vmatpush.bf16.msrb.mxu0 %v1042_v56 }
 0xa0d   : > { %v1048_v10 = vpop.permute.xlu1 %1047 }
 0xa0e   : > { %1086 = vmatpush.bf16.msrb.mxu0 %v1041_v61 }
 0xa12   : > { %1428 = vmatpush.bf16.msk.msrb.mxu0 %vm2129_vm13, %v1427_v63 }
 0xa16   : > { %1433 = vmatpush.bf16.msk.msrb.mxu0 %vm2129_vm13, %v1432_v2 }
 0xa19   : > { %1434 = vmatmul.msk.bf16.vlgmr.msrb.gmra.mxu0 %vm597_vm10, %v1467_v3 }
 0xa29   : > { %1435 = vmatmul.msk.bf16.gmra.mxu0 %vm597_vm10, %v1468_v4 }
 0xa96   : > { %v1090_v7 = vpop.f32.mrf.mxu0 }
 0xa97   : > { %v1091_v12 = vadd.f32 %v1090_v7, %v1048_v10 }
 0xa99   : > { %v1100_v15 = vmax.f32 %v1091_v12, 0.0 }
 0xa9e   : > { %v1092_v11 = vpop.f32.mrf.mxu0 }
 0xa9f   : > { %v1093_v14 = vadd.f32 %v1092_v11, %v1053_v13 }
 0xaa1   : > { %v1101_v16 = vmax.f32 %v1093_v14, 0.0 }
 0xaa3   : > { %v1687_v17 = vpack.i.bf16 %v1101_v16, %v1100_v15  ;;  %v1167_v62 = vpack.c.bf16 %v1101_v16, %v1100_v15 }
 0xaa5   : > { %1688 = vrot.lane.b32.xlu1 %v1687_v17, %s1794_s26 }
 0xaa6   : > { %v1095_v20 = vpop.f32.mrf.mxu0 }
 0xaa7   : > { %v1096_v21 = vadd.f32 %v1095_v20, %v1058_v6 }
 0xaa9   : > { %v1102_v25 = vmax.f32 %v1096_v21, 0.0 }
 0xaae   : > { %v1097_v23 = vpop.f32.mrf.mxu0 }
 0xaaf   : > { %v1098_v24 = vadd.f32 %v1097_v23, %v1063_v22 }
 0xab1   : > { %v1103_v19 = vmax.f32 %v1098_v24, 0.0 }
 0xab3   : > { %v1682_v26 = vpack.i.bf16 %v1103_v19, %v1102_v25  ;;  %v1168_v57 = vpack.c.bf16 %v1103_v19, %v1102_v25 }
 0xab5   : > { %1683 = vrot.lane.b32.xlu0 %v1682_v26, %s1794_s26 }
 0xb17   : > { %v1689_v27 = vpop.permute.xlu1 %1688 }
 0xb18   : > { %v1691_v28 = vunpack.i.h.bf16 %v1689_v27  ;;  %v1690_v29 = vunpack.i.l.bf16 %v1689_v27 }
 0xb1a   : > { %v1106_v5 = vsel %vm837_vm8, %v1690_v29, %v1100_v15  ;;  %v1109_v30 = vsel %vm837_vm8, %v1691_v28, %v1101_v16 }
 0xb1b   : > { %v1697_v31 = vpack.i.bf16 %v1109_v30, %v1106_v5 }
 0xb1d   : > { %1698 = vrot.lane.b32.xlu0 %v1697_v31, %s1794_s26 }
 0xb27   : > { %v1684_v32 = vpop.permute.xlu0 %1683 }
 0xb28   : > { %v1686_v33 = vunpack.i.h.bf16 %v1684_v32  ;;  %v1685_v34 = vunpack.i.l.bf16 %v1684_v32 }
 0xb2a   : > { %v1112_v18 = vsel %vm837_vm8, %v1685_v34, %v1102_v25  ;;  %v1115_v35 = vsel %vm837_vm8, %v1686_v33, %v1103_v19 }
 0xb2b   : > { %v1692_v36 = vpack.i.bf16 %v1115_v35, %v1112_v18 }
 0xb2d   : > { %1693 = vrot.lane.b32.xlu2 %v1692_v36, %s1794_s26  ;;  %s1744_s26 = scalar_lea.hbm %s2271_s10, 2 }
 0xb2e   : > { %p1746_p1 = scmp.lt.s32.totalorder %s1744_s26, %s1740_s11 }
 0xb30   : > { %p1747_p2 = por %p1746_p1, %p1745_p0 }
 0xb32   : > { %p1748_p3 = pnand %p1747_p2, %p1743_p13 }
 0xb87   : > { %v1694_v37 = vpop.permute.xlu2 %1693 }
 0xb88   : > { %v1696_v38 = vunpack.i.h.bf16 %v1694_v37  ;;  %v1695_v39 = vunpack.i.l.bf16 %v1694_v37 }
 0xb8a   : > { %v1126_v40 = vsel %vm837_vm8, %v1695_v39, %v1102_v25  ;;  %v1127_v41 = vsel %vm837_vm8, %v1696_v38, %v1103_v19 }
 0xb8b   : > { %v1702_v8 = vpack.i.bf16 %v1127_v41, %v1126_v40 }
 0xb8d   : > { %1703 = vrot.lane.b32.xlu1 %v1702_v8, %s1789_s12  ;;  %1713 = vrot.lane.b32.xlu0 %v1702_v8, %s1795_s28 }
 0xb8f   : > { %v1699_v42 = vpop.permute.xlu0 %1698 }
 0xb90   : > { %v1701_v43 = vunpack.i.h.bf16 %v1699_v42  ;;  %v1700_v44 = vunpack.i.l.bf16 %v1699_v42 }
 0xb92   : > { %v1124_v45 = vsel %vm837_vm8, %v1700_v44, %v1100_v15  ;;  %v1125_v46 = vsel %vm837_vm8, %v1701_v43, %v1101_v16 }
 0xb93   : > { %v1717_v47 = vpack.i.bf16 %v1125_v46, %v1124_v45 }
 0xb95   : > { %1718 = vrot.lane.b32.xlu1 %v1717_v47, %s1795_s28  ;;  %1708 = vrot.lane.b32.xlu2 %v1717_v47, %s1789_s12  ;;  %s363_s28 = sand.u32 1, %s1778_s16  }
 0xb96   : > { %s364_s29 = scalar_lea.vmem [#allocation3], %s363_s28  ;;  %s1197_s14 = scalar_lea.sflag [#allocation4], %s363_s28 }
 0xb97   : > { %s1207_s13 = sshll.u32 %s364_s29, 4  ;;  %s1208_s13 = int_to_ptr.vmem [resolvable:$true] %s1207_s13 }
 0xb9d   : > { %1174 = vperm.xlu2 %1519, %v1171_v49  }
 0xbef   : > { %v1709_v50 = vpop.permute.xlu2 %1708 }
 0xbf0   : > { %v1711_v53 = vunpack.i.h.bf16 %v1709_v50  ;;  %v1710_v54 = vunpack.i.l.bf16 %v1709_v50 }
 0xbf2   : > { %v1444_v56 = vpack.c.bf16 %v1711_v53, %v1710_v54 }
 0xbf7   : > { %v1175_v4 = vpop.permute.xlu2 %1174 }
 0xbf8   : > { %v1177_v6 = vperm.slane %v1175_v4, 0 }
 0xbff   : > { %v1704_v51 = vpop.permute.xlu1 %1703  ;;  %v1714_v59 = vpop.permute.xlu0 %1713 }
 0xc00   : > { %v1706_v52 = vunpack.i.h.bf16 %v1704_v51  ;;  %v1705_v9 = vunpack.i.l.bf16 %v1704_v51  ;;  %v1716_v60 = vunpack.i.h.bf16 %v1714_v59  ;;  %v1715_v61 = vunpack.i.l.bf16 %v1714_v59 }
 0xc02   : > { %v1439_v55 = vpack.c.bf16 %v1706_v52, %v1705_v9  ;;  %v1449_v0 = vpack.c.bf16 %v1716_v60, %v1715_v61 }
 0xc04   : > { %1440 = vmatpush.bf16.msk.msrb.mxu1 %vm2119_vm11, %v1439_v55 }
 0xc07   : > { %v1719_v63 = vpop.permute.xlu1 %1718 }
 0xc08   : > { %1445 = vmatpush.bf16.msk.msrb.mxu1 %vm2119_vm11, %v1444_v56  ;;  %v1721_v1 = vunpack.i.h.bf16 %v1719_v63  ;;  %v1720_v2 = vunpack.i.l.bf16 %v1719_v63 }
 0xc0a   : > { %v1454_v3 = vpack.c.bf16 %v1721_v1, %v1720_v2 }
 0xc0c   : > { %1185 = vmatpush.bf16.msrb.mxu1 %v1168_v57 }
 0xc10   : > { %1186 = vmatpush.bf16.msrb.mxu1 %v1167_v62 }
 0xc14   : > { %1450 = vmatpush.bf16.msk.msrb.mxu1 %vm2129_vm13, %v1449_v0 }
 0xc18   : > { %1455 = vmatpush.bf16.msk.msrb.mxu1 %vm2129_vm13, %v1454_v3 }
 0xc1b   : > { %1456 = vmatmul.msk.bf16.vlgmr.msrb.gmra.mxu1 %vm597_vm10, %v1164_v48 }
 0xc98   : > { %v1190_v7 = vpop.f32.mrf.mxu1 }
 0xc99   : > { %v1191_v58 = vadd.f32 %v1190_v7, %v1177_v6 }
 0xc9b   : > { %1195 = vst.msk [vmem:[%s364_s29] sm:$0x1] %vm1194_vm14, %v1191_v58 }
 0xc9c   : > { %1751 = shalt.err (!%p1748_p3)
}
 0xc9d   : > { %1472 = dma.vmem_to_hbm [thread:$0]  (%p1892_p5), %s1208_s13, 16, %s1210_s30, %s1197_s14  }
 0xca0   : > { %v1192_v10 = vpop.f32.mrf.mxu1 }
 0xca1 PF: > { %p1478_p4 = scmp.ge.s32.totalorder %s1786_s18, 2  ;;  %s1221_s28 = sand.u32 1, %s1774_s15  }
 0xca2   : > { %s1222_s27 = scalar_lea.sflag [#allocation4], %s1221_s28 }
 0xca3   : > { %p1475_p7 = pnand %p1478_p4, %p1896_p6 }
 0xca5   : > { %p1476_p8 = pneg %p1475_p7 }
 0xca7   : > { %1769 = dma.done.wait (%p1476_p8), %s1222_s27, 16  }
 0xca8   : > { %1771 = vsyncadd (%p1476_p8), %s1222_s27, 4294967280  ;;  %p22_p9 = scmp.ge.s32.totalorder %s1879_s20, 4   ;;  %s2286_s15 = smov %s1778_s16 }
 0xca9   : > { %s2287_s16 = smov %s1782_s17  ;;  %s2288_s17 = smov %s1890_s23 }
 0xcaa   : > { %s2289_s18 = smov %s1879_s20  ;;  %24 = sbr.rel (!%p22_p9) target bundleno = 6 (0x6), region = 102 }
 0xcaf   :  { %1227 = vsyncpa [#allocation4], 1 }
 0xcb0   :  { %1229 = vsyncpa [#allocation4 + $0x1], 1 }

</bundles_post_ra>
